<compile_context>
chip_gen: v6e
topology: v6e:2x2x1
jax: 0.10.0
libtpu: 0.0.40
codegen_flags: <defaults>
</compile_context>

<pallas_src>
import functools
import math

import jax
import jax.numpy as jnp
from jax import lax
from jax.experimental import pallas as pl
from jax.experimental.pallas import tpu as pltpu


# ---------------------------------------------------------------------------
# Fused encoder-stack kernel: one grid step = (batch element b, layer l)
# ---------------------------------------------------------------------------

def _encoder_stack_kernel(src_ref, bias_ref,
                          wq_ref, bq_ref, wk_ref, bk_ref, wv_ref, bv_ref,
                          wo_ref, bo_ref, w1_ref, b1_ref, w2_ref, b2_ref,
                          g_ref, beta_ref,
                          out_ref, x_s,
                          *, num_heads):
    l = pl.program_id(1)

    # Layer 0: load this batch element's input into the carried activation.
    @pl.when(l == 0)
    def _():
        x_s[...] = src_ref[0]

    x = x_s[...]                       # (S, D) activation carried across layers
    bias = bias_ref[0]                 # (1, S) additive mask bias (0 or -inf)

    d_model = wq_ref.shape[-1]
    d_k = d_model // num_heads
    inv_sqrt_dk = 1.0 / math.sqrt(d_k)

    # --- MultiHeadedAttention -------------------------------------------------
    # All heads' projections fused into single lane-dense (D, D) matmuls.
    q = jnp.dot(x, wq_ref[0], preferred_element_type=jnp.float32) + bq_ref[0]
    k = jnp.dot(x, wk_ref[0], preferred_element_type=jnp.float32) + bk_ref[0]
    v = jnp.dot(x, wv_ref[0], preferred_element_type=jnp.float32) + bv_ref[0]

    head_outs = []
    for h in range(num_heads):                      # static unroll (tiny heads)
        sl = slice(h * d_k, (h + 1) * d_k)
        qh, kh, vh = q[:, sl], k[:, sl], v[:, sl]
        # contract last dims directly (no materialized K.T)
        s = lax.dot_general(qh, kh, (((1,), (1,)), ((), ())),
                            preferred_element_type=jnp.float32)      # (S, S)
        # torch `//` on float tensors is floor division by np.sqrt(d_k)
        s = jnp.floor(s * inv_sqrt_dk)
        # masked_fill(mask == 0, -inf) == add precomputed -inf bias
        # (rows are never fully masked in this harness; all-masked rows would NaN)
        s = s + bias
        m = jnp.max(s, axis=-1, keepdims=True)
        e = jnp.exp(s - m)
        p = e * pl.reciprocal(jnp.sum(e, axis=-1, keepdims=True), approx=True)
        head_outs.append(jnp.dot(p, vh, preferred_element_type=jnp.float32))

    attn = jnp.concatenate(head_outs, axis=-1)      # torch.cat over heads (lane-dense)
    attn = jnp.dot(attn, wo_ref[0], preferred_element_type=jnp.float32) + bo_ref[0]

    x = x + attn
    # reference: `x - self.attention_normalization(x)` -> result discarded (no-op)

    # --- FeedForward ------------------------------------------------------------
    h1 = jnp.dot(x, w1_ref[0], preferred_element_type=jnp.float32) + b1_ref[0]
    h1 = jnp.maximum(h1, 0.0)
    ff = jnp.dot(h1, w2_ref[0], preferred_element_type=jnp.float32) + b2_ref[0]
    x = x + ff

    # --- feedforward LayerNorm --------------------------------------------------
    mean = jnp.mean(x, axis=-1, keepdims=True)
    var = jnp.mean((x - mean) ** 2, axis=-1, keepdims=True)
    y = (x - mean) * lax.rsqrt(var + 1e-5) * g_ref[0] + beta_ref[0]

    x_s[...] = y                                    # carry to next layer

    @pl.when(l == pl.num_programs(1) - 1)
    def _():
        out_ref[0] = y


def encoder_forward(source, source_mask, params, *, num_heads):
    """source: (B, S, D); source_mask: (B, S) with 1=attend, 0=masked."""
    B, S, D = source.shape
    L = params["wq"].shape[0]
    F = params["w1"].shape[-1]

    # Hoisted mask preprocessing: additive bias, computed once per forward.
    bias = jnp.where(source_mask == 0, -jnp.inf, 0.0).astype(jnp.float32)
    bias = bias.reshape(B, 1, S)

    per_batch = lambda b, l: (b, 0, 0)
    per_layer = lambda b, l: (l, 0, 0)

    kernel = functools.partial(_encoder_stack_kernel, num_heads=num_heads)

    return pl.pallas_call(
        kernel,
        grid=(B, L),
        in_specs=[
            pl.BlockSpec((1, S, D), per_batch),     # source
            pl.BlockSpec((1, 1, S), per_batch),     # additive mask bias
            pl.BlockSpec((1, D, D), per_layer),     # wq (all heads, lane-dense)
            pl.BlockSpec((1, 1, D), per_layer),     # bq
            pl.BlockSpec((1, D, D), per_layer),     # wk
            pl.BlockSpec((1, 1, D), per_layer),     # bk
            pl.BlockSpec((1, D, D), per_layer),     # wv
            pl.BlockSpec((1, 1, D), per_layer),     # bv
            pl.BlockSpec((1, D, D), per_layer),     # wo (synthesized output proj)
            pl.BlockSpec((1, 1, D), per_layer),     # bo
            pl.BlockSpec((1, D, F), per_layer),     # ff w1
            pl.BlockSpec((1, 1, F), per_layer),     # ff b1
            pl.BlockSpec((1, F, D), per_layer),     # ff w2
            pl.BlockSpec((1, 1, D), per_layer),     # ff b2
            pl.BlockSpec((1, 1, D), per_layer),     # layernorm gamma
            pl.BlockSpec((1, 1, D), per_layer),     # layernorm beta
        ],
        out_specs=pl.BlockSpec((1, S, D), per_batch),
        out_shape=jax.ShapeDtypeStruct((B, S, D), jnp.float32),
        scratch_shapes=[pltpu.VMEM((S, D), jnp.float32)],
        compiler_params=pltpu.CompilerParams(
            dimension_semantics=("parallel", "arbitrary")),
    )(source, bias,
      params["wq"], params["bq"], params["wk"], params["bk"],
      params["wv"], params["bv"], params["wo"], params["bo"],
      params["w1"], params["b1"], params["w2"], params["b2"],
      params["ln_g"], params["ln_b"])


# ---------------------------------------------------------------------------
# Deterministic parameter initialization (per-layer weights stacked on axis 0)
# ---------------------------------------------------------------------------

def _init_linear(key, din, dout):
    kw, kb = jax.random.split(key)
    bound = 1.0 / math.sqrt(din)
    w = jax.random.uniform(kw, (din, dout), jnp.float32, -bound, bound)
    b = jax.random.uniform(kb, (1, dout), jnp.float32, -bound, bound)
    return w, b


def init_encoder_params(key, d_model, num_heads, num_layers, d_ff):
    del num_heads  # per-head Linear(d_model, dk) weights are concatenated into
    #                one lane-dense (d_model, d_model) matrix per Q/K/V; the
    #                uniform init bound (1/sqrt(d_model)) is identical per head.
    names = ["wq", "bq", "wk", "bk", "wv", "bv", "wo", "bo",
             "w1", "b1", "w2", "b2", "ln_g", "ln_b"]
    acc = {n: [] for n in names}
    keys = jax.random.split(key, num_layers)
    for lk in keys:
        kq, kk, kv, ko, k1, k2 = jax.random.split(lk, 6)
        wq, bq = _init_linear(kq, d_model, d_model)
        wk, bk = _init_linear(kk, d_model, d_model)
        wv, bv = _init_linear(kv, d_model, d_model)
        wo, bo = _init_linear(ko, d_model, d_model)
        w1, b1 = _init_linear(k1, d_model, d_ff)
        w2, b2 = _init_linear(k2, d_ff, d_model)
        vals = dict(wq=wq, bq=bq, wk=wk, bk=bk, wv=wv, bv=bv, wo=wo, bo=bo,
                    w1=w1, b1=b1, w2=w2, b2=b2,
                    ln_g=jnp.ones((1, d_model), jnp.float32),
                    ln_b=jnp.zeros((1, d_model), jnp.float32))
        for n in names:
            acc[n].append(vals[n])
    return {n: jnp.stack(acc[n]) for n in names}


# ---------------------------------------------------------------------------
# Main
# ---------------------------------------------------------------------------

if __name__ == "__main__":
    D_MODEL, NUM_HEADS, NUM_ENCODERS = 32, 4, 2
    D_FF = 2048                      # EncoderLayer default d_ff
    B, S = 2, 8

    root = jax.random.PRNGKey(0)
    kp, ks = jax.random.split(root)

    params = init_encoder_params(kp, D_MODEL, NUM_HEADS, NUM_ENCODERS, D_FF)
    source = jax.random.normal(ks, (B, S, D_MODEL), jnp.float32)
    # padding-style mask (1 = attend, 0 = masked); no row is fully masked
    source_mask = jnp.ones((B, S), jnp.float32).at[1, -1].set(0.0)

    fwd = jax.jit(encoder_forward, static_argnames=("num_heads",))
    out = fwd(source, source_mask, params, num_heads=NUM_HEADS)
    out = jax.block_until_ready(out)

    assert out.shape == (B, S, D_MODEL)
    assert bool(jnp.all(jnp.isfinite(out)))
    print("KERNEL_OK")
</pallas_src>

<mosaic_0001>
module attributes {stable_mosaic.version = 11 : i64} {
  func.func @_encoder_stack_kernel(%arg0: i32, %arg1: i32, %arg2: memref<1x8x32xf32, #tpu.memory_space<vmem>>, %arg3: memref<1x1x8xf32, #tpu.memory_space<vmem>>, %arg4: memref<1x32x32xf32, #tpu.memory_space<vmem>>, %arg5: memref<1x1x32xf32, #tpu.memory_space<vmem>>, %arg6: memref<1x32x32xf32, #tpu.memory_space<vmem>>, %arg7: memref<1x1x32xf32, #tpu.memory_space<vmem>>, %arg8: memref<1x32x32xf32, #tpu.memory_space<vmem>>, %arg9: memref<1x1x32xf32, #tpu.memory_space<vmem>>, %arg10: memref<1x32x32xf32, #tpu.memory_space<vmem>>, %arg11: memref<1x1x32xf32, #tpu.memory_space<vmem>>, %arg12: memref<1x32x2048xf32, #tpu.memory_space<vmem>>, %arg13: memref<1x1x2048xf32, #tpu.memory_space<vmem>>, %arg14: memref<1x2048x32xf32, #tpu.memory_space<vmem>>, %arg15: memref<1x1x32xf32, #tpu.memory_space<vmem>>, %arg16: memref<1x1x32xf32, #tpu.memory_space<vmem>>, %arg17: memref<1x1x32xf32, #tpu.memory_space<vmem>>, %arg18: memref<1x8x32xf32, #tpu.memory_space<vmem>>, %arg19: memref<8x32xf32, #tpu.memory_space<vmem>>) attributes {dimension_semantics = [#tpu.dimension_semantics<parallel>, #tpu.dimension_semantics<arbitrary>], iteration_bounds = array<i64: 2, 2>, scalar_prefetch = 0 : i64, scratch_operands = 1 : i64, tpu.core_type = #tpu.core_type<tc>, window_params = [{transform_indices = @transform_0, window_bounds = array<i64: 1, 8, 32>}, {transform_indices = @transform_1, window_bounds = array<i64: 1, 1, 8>}, {transform_indices = @transform_2, window_bounds = array<i64: 1, 32, 32>}, {transform_indices = @transform_3, window_bounds = array<i64: 1, 1, 32>}, {transform_indices = @transform_4, window_bounds = array<i64: 1, 32, 32>}, {transform_indices = @transform_5, window_bounds = array<i64: 1, 1, 32>}, {transform_indices = @transform_6, window_bounds = array<i64: 1, 32, 32>}, {transform_indices = @transform_7, window_bounds = array<i64: 1, 1, 32>}, {transform_indices = @transform_8, window_bounds = array<i64: 1, 32, 32>}, {transform_indices = @transform_9, window_bounds = array<i64: 1, 1, 32>}, {transform_indices = @transform_10, window_bounds = array<i64: 1, 32, 2048>}, {transform_indices = @transform_11, window_bounds = array<i64: 1, 1, 2048>}, {transform_indices = @transform_12, window_bounds = array<i64: 1, 2048, 32>}, {transform_indices = @transform_13, window_bounds = array<i64: 1, 1, 32>}, {transform_indices = @transform_14, window_bounds = array<i64: 1, 1, 32>}, {transform_indices = @transform_15, window_bounds = array<i64: 1, 1, 32>}, {transform_indices = @transform_16, window_bounds = array<i64: 1, 8, 32>}]} {
    %c0_i32 = arith.constant 0 : i32
    %0 = arith.cmpi eq, %arg1, %c0_i32 : i32
    %1 = arith.extui %0 : i1 to i32
    %c0_i32_0 = arith.constant 0 : i32
    %2 = arith.cmpi ne, %1, %c0_i32_0 : i32
    scf.if %2 {
      %c0_81 = arith.constant 0 : index
      %c0_82 = arith.constant 0 : index
      %c0_83 = arith.constant 0 : index
      %163 = vector.load %arg2[%c0_81, %c0_82, %c0_83] : memref<1x8x32xf32, #tpu.memory_space<vmem>>, vector<1x8x32xf32>
      %164 = vector.shape_cast %163 : vector<1x8x32xf32> to vector<8x32xf32>
      %c0_84 = arith.constant 0 : index
      %c0_85 = arith.constant 0 : index
      %165 = vector.load %arg19[%c0_84, %c0_85] : memref<8x32xf32, #tpu.memory_space<vmem>>, vector<8x32xf32>
      tpu.vector_store %arg19[%c0_84, %c0_85], %164 {strides = array<i32>} : memref<8x32xf32, #tpu.memory_space<vmem>>, vector<8x32xf32>,
    } else {
    }
    %c0 = arith.constant 0 : index
    %c0_1 = arith.constant 0 : index
    %3 = vector.load %arg19[%c0, %c0_1] : memref<8x32xf32, #tpu.memory_space<vmem>>, vector<8x32xf32>
    %c0_2 = arith.constant 0 : index
    %c0_3 = arith.constant 0 : index
    %c0_4 = arith.constant 0 : index
    %4 = vector.load %arg3[%c0_2, %c0_3, %c0_4] : memref<1x1x8xf32, #tpu.memory_space<vmem>>, vector<1x1x8xf32>
    %5 = vector.shape_cast %4 : vector<1x1x8xf32> to vector<1x8xf32>
    %c0_5 = arith.constant 0 : index
    %c0_6 = arith.constant 0 : index
    %c0_7 = arith.constant 0 : index
    %6 = vector.load %arg4[%c0_5, %c0_6, %c0_7] : memref<1x32x32xf32, #tpu.memory_space<vmem>>, vector<1x32x32xf32>
    %7 = vector.shape_cast %6 : vector<1x32x32xf32> to vector<32x32xf32>
    %cst = arith.constant dense<0.000000e+00> : vector<8x32xf32>
    %8 = tpu.matmul %3, %7, %cst {dimension_numbers = #tpu.dot_dimension_numbers<[1], [0], [0], [1], [0, 0, 1, 1], [], []>} : vector<8x32xf32>, vector<32x32xf32>, vector<8x32xf32> -> vector<8x32xf32>
    %c0_8 = arith.constant 0 : index
    %c0_9 = arith.constant 0 : index
    %c0_10 = arith.constant 0 : index
    %9 = vector.load %arg5[%c0_8, %c0_9, %c0_10] : memref<1x1x32xf32, #tpu.memory_space<vmem>>, vector<1x1x32xf32>
    %10 = vector.shape_cast %9 : vector<1x1x32xf32> to vector<1x32xf32>
    %11 = vector.broadcast %10 : vector<1x32xf32> to vector<8x32xf32>
    %12 = arith.addf %8, %11 : vector<8x32xf32>
    %c0_11 = arith.constant 0 : index
    %c0_12 = arith.constant 0 : index
    %c0_13 = arith.constant 0 : index
    %13 = vector.load %arg6[%c0_11, %c0_12, %c0_13] : memref<1x32x32xf32, #tpu.memory_space<vmem>>, vector<1x32x32xf32>
    %14 = vector.shape_cast %13 : vector<1x32x32xf32> to vector<32x32xf32>
    %cst_14 = arith.constant dense<0.000000e+00> : vector<8x32xf32>
    %15 = tpu.matmul %3, %14, %cst_14 {dimension_numbers = #tpu.dot_dimension_numbers<[1], [0], [0], [1], [0, 0, 1, 1], [], []>} : vector<8x32xf32>, vector<32x32xf32>, vector<8x32xf32> -> vector<8x32xf32>
    %c0_15 = arith.constant 0 : index
    %c0_16 = arith.constant 0 : index
    %c0_17 = arith.constant 0 : index
    %16 = vector.load %arg7[%c0_15, %c0_16, %c0_17] : memref<1x1x32xf32, #tpu.memory_space<vmem>>, vector<1x1x32xf32>
    %17 = vector.shape_cast %16 : vector<1x1x32xf32> to vector<1x32xf32>
    %18 = vector.broadcast %17 : vector<1x32xf32> to vector<8x32xf32>
    %19 = arith.addf %15, %18 : vector<8x32xf32>
    %c0_18 = arith.constant 0 : index
    %c0_19 = arith.constant 0 : index
    %c0_20 = arith.constant 0 : index
    %20 = vector.load %arg8[%c0_18, %c0_19, %c0_20] : memref<1x32x32xf32, #tpu.memory_space<vmem>>, vector<1x32x32xf32>
    %21 = vector.shape_cast %20 : vector<1x32x32xf32> to vector<32x32xf32>
    %cst_21 = arith.constant dense<0.000000e+00> : vector<8x32xf32>
    %22 = tpu.matmul %3, %21, %cst_21 {dimension_numbers = #tpu.dot_dimension_numbers<[1], [0], [0], [1], [0, 0, 1, 1], [], []>} : vector<8x32xf32>, vector<32x32xf32>, vector<8x32xf32> -> vector<8x32xf32>
    %c0_22 = arith.constant 0 : index
    %c0_23 = arith.constant 0 : index
    %c0_24 = arith.constant 0 : index
    %23 = vector.load %arg9[%c0_22, %c0_23, %c0_24] : memref<1x1x32xf32, #tpu.memory_space<vmem>>, vector<1x1x32xf32>
    %24 = vector.shape_cast %23 : vector<1x1x32xf32> to vector<1x32xf32>
    %25 = vector.broadcast %24 : vector<1x32xf32> to vector<8x32xf32>
    %26 = arith.addf %22, %25 : vector<8x32xf32>
    %27 = vector.extract_strided_slice %12 {offsets = [0, 0], sizes = [8, 8], strides = [1, 1]} : vector<8x32xf32> to vector<8x8xf32>
    %28 = vector.extract_strided_slice %19 {offsets = [0, 0], sizes = [8, 8], strides = [1, 1]} : vector<8x32xf32> to vector<8x8xf32>
    %29 = vector.extract_strided_slice %26 {offsets = [0, 0], sizes = [8, 8], strides = [1, 1]} : vector<8x32xf32> to vector<8x8xf32>
    %cst_25 = arith.constant dense<0.000000e+00> : vector<8x8xf32>
    %30 = tpu.matmul %27, %28, %cst_25 {dimension_numbers = #tpu.dot_dimension_numbers<[1], [1], [0], [0], [0, 0, 1, 0], [], []>} : vector<8x8xf32>, vector<8x8xf32>, vector<8x8xf32> -> vector<8x8xf32>
    %cst_26 = arith.constant 0.353553385 : f32
    %31 = vector.broadcast %cst_26 : f32 to vector<8x8xf32>
    %32 = arith.mulf %30, %31 : vector<8x8xf32>
    %33 = math.floor %32 : vector<8x8xf32>
    %34 = vector.broadcast %5 : vector<1x8xf32> to vector<8x8xf32>
    %35 = arith.addf %33, %34 : vector<8x8xf32>
    %cst_27 = arith.constant dense<0xFF800000> : vector<8xf32>
    %36 = vector.multi_reduction <maximumf>, %35, %cst_27 [1] : vector<8x8xf32> to vector<8xf32>
    %37 = vector.shape_cast %36 : vector<8xf32> to vector<8x1xf32>
    %38 = vector.broadcast %37 : vector<8x1xf32> to vector<8x8xf32>
    %39 = arith.subf %35, %38 : vector<8x8xf32>
    %40 = math.exp %39 : vector<8x8xf32>
    %cst_28 = arith.constant dense<0.000000e+00> : vector<8xf32>
    %41 = vector.multi_reduction <add>, %40, %cst_28 [1] : vector<8x8xf32> to vector<8xf32>
    %42 = vector.shape_cast %41 : vector<8xf32> to vector<8x1xf32>
    %43 = tpu.reciprocal %42 {approx = true} : vector<8x1xf32> -> vector<8x1xf32>
    %44 = vector.broadcast %43 : vector<8x1xf32> to vector<8x8xf32>
    %45 = arith.mulf %40, %44 : vector<8x8xf32>
    %cst_29 = arith.constant dense<0.000000e+00> : vector<8x8xf32>
    %46 = tpu.matmul %45, %29, %cst_29 {dimension_numbers = #tpu.dot_dimension_numbers<[1], [0], [0], [1], [0, 0, 1, 1], [], []>} : vector<8x8xf32>, vector<8x8xf32>, vector<8x8xf32> -> vector<8x8xf32>
    %47 = vector.extract_strided_slice %12 {offsets = [0, 8], sizes = [8, 8], strides = [1, 1]} : vector<8x32xf32> to vector<8x8xf32>
    %48 = vector.extract_strided_slice %19 {offsets = [0, 8], sizes = [8, 8], strides = [1, 1]} : vector<8x32xf32> to vector<8x8xf32>
    %49 = vector.extract_strided_slice %26 {offsets = [0, 8], sizes = [8, 8], strides = [1, 1]} : vector<8x32xf32> to vector<8x8xf32>
    %cst_30 = arith.constant dense<0.000000e+00> : vector<8x8xf32>
    %50 = tpu.matmul %47, %48, %cst_30 {dimension_numbers = #tpu.dot_dimension_numbers<[1], [1], [0], [0], [0, 0, 1, 0], [], []>} : vector<8x8xf32>, vector<8x8xf32>, vector<8x8xf32> -> vector<8x8xf32>
    %cst_31 = arith.constant 0.353553385 : f32
    %51 = vector.broadcast %cst_31 : f32 to vector<8x8xf32>
    %52 = arith.mulf %50, %51 : vector<8x8xf32>
    %53 = math.floor %52 : vector<8x8xf32>
    %54 = vector.broadcast %5 : vector<1x8xf32> to vector<8x8xf32>
    %55 = arith.addf %53, %54 : vector<8x8xf32>
    %cst_32 = arith.constant dense<0xFF800000> : vector<8xf32>
    %56 = vector.multi_reduction <maximumf>, %55, %cst_32 [1] : vector<8x8xf32> to vector<8xf32>
    %57 = vector.shape_cast %56 : vector<8xf32> to vector<8x1xf32>
    %58 = vector.broadcast %57 : vector<8x1xf32> to vector<8x8xf32>
    %59 = arith.subf %55, %58 : vector<8x8xf32>
    %60 = math.exp %59 : vector<8x8xf32>
    %cst_33 = arith.constant dense<0.000000e+00> : vector<8xf32>
    %61 = vector.multi_reduction <add>, %60, %cst_33 [1] : vector<8x8xf32> to vector<8xf32>
    %62 = vector.shape_cast %61 : vector<8xf32> to vector<8x1xf32>
    %63 = tpu.reciprocal %62 {approx = true} : vector<8x1xf32> -> vector<8x1xf32>
    %64 = vector.broadcast %63 : vector<8x1xf32> to vector<8x8xf32>
    %65 = arith.mulf %60, %64 : vector<8x8xf32>
    %cst_34 = arith.constant dense<0.000000e+00> : vector<8x8xf32>
    %66 = tpu.matmul %65, %49, %cst_34 {dimension_numbers = #tpu.dot_dimension_numbers<[1], [0], [0], [1], [0, 0, 1, 1], [], []>} : vector<8x8xf32>, vector<8x8xf32>, vector<8x8xf32> -> vector<8x8xf32>
    %67 = vector.extract_strided_slice %12 {offsets = [0, 16], sizes = [8, 8], strides = [1, 1]} : vector<8x32xf32> to vector<8x8xf32>
    %68 = vector.extract_strided_slice %19 {offsets = [0, 16], sizes = [8, 8], strides = [1, 1]} : vector<8x32xf32> to vector<8x8xf32>
    %69 = vector.extract_strided_slice %26 {offsets = [0, 16], sizes = [8, 8], strides = [1, 1]} : vector<8x32xf32> to vector<8x8xf32>
    %cst_35 = arith.constant dense<0.000000e+00> : vector<8x8xf32>
    %70 = tpu.matmul %67, %68, %cst_35 {dimension_numbers = #tpu.dot_dimension_numbers<[1], [1], [0], [0], [0, 0, 1, 0], [], []>} : vector<8x8xf32>, vector<8x8xf32>, vector<8x8xf32> -> vector<8x8xf32>
    %cst_36 = arith.constant 0.353553385 : f32
    %71 = vector.broadcast %cst_36 : f32 to vector<8x8xf32>
    %72 = arith.mulf %70, %71 : vector<8x8xf32>
    %73 = math.floor %72 : vector<8x8xf32>
    %74 = vector.broadcast %5 : vector<1x8xf32> to vector<8x8xf32>
    %75 = arith.addf %73, %74 : vector<8x8xf32>
    %cst_37 = arith.constant dense<0xFF800000> : vector<8xf32>
    %76 = vector.multi_reduction <maximumf>, %75, %cst_37 [1] : vector<8x8xf32> to vector<8xf32>
    %77 = vector.shape_cast %76 : vector<8xf32> to vector<8x1xf32>
    %78 = vector.broadcast %77 : vector<8x1xf32> to vector<8x8xf32>
    %79 = arith.subf %75, %78 : vector<8x8xf32>
    %80 = math.exp %79 : vector<8x8xf32>
    %cst_38 = arith.constant dense<0.000000e+00> : vector<8xf32>
    %81 = vector.multi_reduction <add>, %80, %cst_38 [1] : vector<8x8xf32> to vector<8xf32>
    %82 = vector.shape_cast %81 : vector<8xf32> to vector<8x1xf32>
    %83 = tpu.reciprocal %82 {approx = true} : vector<8x1xf32> -> vector<8x1xf32>
    %84 = vector.broadcast %83 : vector<8x1xf32> to vector<8x8xf32>
    %85 = arith.mulf %80, %84 : vector<8x8xf32>
    %cst_39 = arith.constant dense<0.000000e+00> : vector<8x8xf32>
    %86 = tpu.matmul %85, %69, %cst_39 {dimension_numbers = #tpu.dot_dimension_numbers<[1], [0], [0], [1], [0, 0, 1, 1], [], []>} : vector<8x8xf32>, vector<8x8xf32>, vector<8x8xf32> -> vector<8x8xf32>
    %87 = vector.extract_strided_slice %12 {offsets = [0, 24], sizes = [8, 8], strides = [1, 1]} : vector<8x32xf32> to vector<8x8xf32>
    %88 = vector.extract_strided_slice %19 {offsets = [0, 24], sizes = [8, 8], strides = [1, 1]} : vector<8x32xf32> to vector<8x8xf32>
    %89 = vector.extract_strided_slice %26 {offsets = [0, 24], sizes = [8, 8], strides = [1, 1]} : vector<8x32xf32> to vector<8x8xf32>
    %cst_40 = arith.constant dense<0.000000e+00> : vector<8x8xf32>
    %90 = tpu.matmul %87, %88, %cst_40 {dimension_numbers = #tpu.dot_dimension_numbers<[1], [1], [0], [0], [0, 0, 1, 0], [], []>} : vector<8x8xf32>, vector<8x8xf32>, vector<8x8xf32> -> vector<8x8xf32>
    %cst_41 = arith.constant 0.353553385 : f32
    %91 = vector.broadcast %cst_41 : f32 to vector<8x8xf32>
    %92 = arith.mulf %90, %91 : vector<8x8xf32>
    %93 = math.floor %92 : vector<8x8xf32>
    %94 = vector.broadcast %5 : vector<1x8xf32> to vector<8x8xf32>
    %95 = arith.addf %93, %94 : vector<8x8xf32>
    %cst_42 = arith.constant dense<0xFF800000> : vector<8xf32>
    %96 = vector.multi_reduction <maximumf>, %95, %cst_42 [1] : vector<8x8xf32> to vector<8xf32>
    %97 = vector.shape_cast %96 : vector<8xf32> to vector<8x1xf32>
    %98 = vector.broadcast %97 : vector<8x1xf32> to vector<8x8xf32>
    %99 = arith.subf %95, %98 : vector<8x8xf32>
    %100 = math.exp %99 : vector<8x8xf32>
    %cst_43 = arith.constant dense<0.000000e+00> : vector<8xf32>
    %101 = vector.multi_reduction <add>, %100, %cst_43 [1] : vector<8x8xf32> to vector<8xf32>
    %102 = vector.shape_cast %101 : vector<8xf32> to vector<8x1xf32>
    %103 = tpu.reciprocal %102 {approx = true} : vector<8x1xf32> -> vector<8x1xf32>
    %104 = vector.broadcast %103 : vector<8x1xf32> to vector<8x8xf32>
    %105 = arith.mulf %100, %104 : vector<8x8xf32>
    %cst_44 = arith.constant dense<0.000000e+00> : vector<8x8xf32>
    %106 = tpu.matmul %105, %89, %cst_44 {dimension_numbers = #tpu.dot_dimension_numbers<[1], [0], [0], [1], [0, 0, 1, 1], [], []>} : vector<8x8xf32>, vector<8x8xf32>, vector<8x8xf32> -> vector<8x8xf32>
    %107 = tpu.concatenate %46, %66, %86, %106 in 1 : vector<8x8xf32>, vector<8x8xf32>, vector<8x8xf32>, vector<8x8xf32> -> vector<8x32xf32>
    %c0_45 = arith.constant 0 : index
    %c0_46 = arith.constant 0 : index
    %c0_47 = arith.constant 0 : index
    %108 = vector.load %arg10[%c0_45, %c0_46, %c0_47] : memref<1x32x32xf32, #tpu.memory_space<vmem>>, vector<1x32x32xf32>
    %109 = vector.shape_cast %108 : vector<1x32x32xf32> to vector<32x32xf32>
    %cst_48 = arith.constant dense<0.000000e+00> : vector<8x32xf32>
    %110 = tpu.matmul %107, %109, %cst_48 {dimension_numbers = #tpu.dot_dimension_numbers<[1], [0], [0], [1], [0, 0, 1, 1], [], []>} : vector<8x32xf32>, vector<32x32xf32>, vector<8x32xf32> -> vector<8x32xf32>
    %c0_49 = arith.constant 0 : index
    %c0_50 = arith.constant 0 : index
    %c0_51 = arith.constant 0 : index
    %111 = vector.load %arg11[%c0_49, %c0_50, %c0_51] : memref<1x1x32xf32, #tpu.memory_space<vmem>>, vector<1x1x32xf32>
    %112 = vector.shape_cast %111 : vector<1x1x32xf32> to vector<1x32xf32>
    %113 = vector.broadcast %112 : vector<1x32xf32> to vector<8x32xf32>
    %114 = arith.addf %110, %113 : vector<8x32xf32>
    %115 = arith.addf %3, %114 : vector<8x32xf32>
    %c0_52 = arith.constant 0 : index
    %c0_53 = arith.constant 0 : index
    %c0_54 = arith.constant 0 : index
    %116 = vector.load %arg12[%c0_52, %c0_53, %c0_54] : memref<1x32x2048xf32, #tpu.memory_space<vmem>>, vector<1x32x2048xf32>
    %117 = vector.shape_cast %116 : vector<1x32x2048xf32> to vector<32x2048xf32>
    %cst_55 = arith.constant dense<0.000000e+00> : vector<8x2048xf32>
    %118 = tpu.matmul %115, %117, %cst_55 {dimension_numbers = #tpu.dot_dimension_numbers<[1], [0], [0], [1], [0, 0, 1, 1], [], []>} : vector<8x32xf32>, vector<32x2048xf32>, vector<8x2048xf32> -> vector<8x2048xf32>
    %c0_56 = arith.constant 0 : index
    %c0_57 = arith.constant 0 : index
    %c0_58 = arith.constant 0 : index
    %119 = vector.load %arg13[%c0_56, %c0_57, %c0_58] : memref<1x1x2048xf32, #tpu.memory_space<vmem>>, vector<1x1x2048xf32>
    %120 = vector.shape_cast %119 : vector<1x1x2048xf32> to vector<1x2048xf32>
    %121 = vector.broadcast %120 : vector<1x2048xf32> to vector<8x2048xf32>
    %122 = arith.addf %118, %121 : vector<8x2048xf32>
    %cst_59 = arith.constant 0.000000e+00 : f32
    %123 = vector.broadcast %cst_59 : f32 to vector<8x2048xf32>
    %124 = arith.maximumf %122, %123 : vector<8x2048xf32>
    %c0_60 = arith.constant 0 : index
    %c0_61 = arith.constant 0 : index
    %c0_62 = arith.constant 0 : index
    %125 = vector.load %arg14[%c0_60, %c0_61, %c0_62] : memref<1x2048x32xf32, #tpu.memory_space<vmem>>, vector<1x2048x32xf32>
    %126 = vector.shape_cast %125 : vector<1x2048x32xf32> to vector<2048x32xf32>
    %cst_63 = arith.constant dense<0.000000e+00> : vector<8x32xf32>
    %127 = tpu.matmul %124, %126, %cst_63 {dimension_numbers = #tpu.dot_dimension_numbers<[1], [0], [0], [1], [0, 0, 1, 1], [], []>} : vector<8x2048xf32>, vector<2048x32xf32>, vector<8x32xf32> -> vector<8x32xf32>
    %c0_64 = arith.constant 0 : index
    %c0_65 = arith.constant 0 : index
    %c0_66 = arith.constant 0 : index
    %128 = vector.load %arg15[%c0_64, %c0_65, %c0_66] : memref<1x1x32xf32, #tpu.memory_space<vmem>>, vector<1x1x32xf32>
    %129 = vector.shape_cast %128 : vector<1x1x32xf32> to vector<1x32xf32>
    %130 = vector.broadcast %129 : vector<1x32xf32> to vector<8x32xf32>
    %131 = arith.addf %127, %130 : vector<8x32xf32>
    %132 = arith.addf %115, %131 : vector<8x32xf32>
    %cst_67 = arith.constant dense<0.000000e+00> : vector<8xf32>
    %133 = vector.multi_reduction <add>, %132, %cst_67 [1] : vector<8x32xf32> to vector<8xf32>
    %134 = vector.shape_cast %133 : vector<8xf32> to vector<8x1xf32>
    %cst_68 = arith.constant 3.200000e+01 : f32
    %135 = vector.broadcast %cst_68 : f32 to vector<8x1xf32>
    %136 = arith.divf %134, %135 : vector<8x1xf32>
    %137 = vector.broadcast %136 : vector<8x1xf32> to vector<8x32xf32>
    %138 = arith.subf %132, %137 : vector<8x32xf32>
    %139 = arith.mulf %138, %138 : vector<8x32xf32>
    %cst_69 = arith.constant dense<0.000000e+00> : vector<8xf32>
    %140 = vector.multi_reduction <add>, %139, %cst_69 [1] : vector<8x32xf32> to vector<8xf32>
    %141 = vector.shape_cast %140 : vector<8xf32> to vector<8x1xf32>
    %cst_70 = arith.constant 3.200000e+01 : f32
    %142 = vector.broadcast %cst_70 : f32 to vector<8x1xf32>
    %143 = arith.divf %141, %142 : vector<8x1xf32>
    %144 = vector.broadcast %136 : vector<8x1xf32> to vector<8x32xf32>
    %145 = arith.subf %132, %144 : vector<8x32xf32>
    %cst_71 = arith.constant 9.99999974E-6 : f32
    %146 = vector.broadcast %cst_71 : f32 to vector<8x1xf32>
    %147 = arith.addf %143, %146 : vector<8x1xf32>
    %148 = math.rsqrt %147 : vector<8x1xf32>
    %149 = vector.broadcast %148 : vector<8x1xf32> to vector<8x32xf32>
    %150 = arith.mulf %145, %149 : vector<8x32xf32>
    %c0_72 = arith.constant 0 : index
    %c0_73 = arith.constant 0 : index
    %c0_74 = arith.constant 0 : index
    %151 = vector.load %arg16[%c0_72, %c0_73, %c0_74] : memref<1x1x32xf32, #tpu.memory_space<vmem>>, vector<1x1x32xf32>
    %152 = vector.shape_cast %151 : vector<1x1x32xf32> to vector<1x32xf32>
    %153 = vector.broadcast %152 : vector<1x32xf32> to vector<8x32xf32>
    %154 = arith.mulf %150, %153 : vector<8x32xf32>
    %c0_75 = arith.constant 0 : index
    %c0_76 = arith.constant 0 : index
    %c0_77 = arith.constant 0 : index
    %155 = vector.load %arg17[%c0_75, %c0_76, %c0_77] : memref<1x1x32xf32, #tpu.memory_space<vmem>>, vector<1x1x32xf32>
    %156 = vector.shape_cast %155 : vector<1x1x32xf32> to vector<1x32xf32>
    %157 = vector.broadcast %156 : vector<1x32xf32> to vector<8x32xf32>
    %158 = arith.addf %154, %157 : vector<8x32xf32>
    %c0_78 = arith.constant 0 : index
    %c0_79 = arith.constant 0 : index
    %159 = vector.load %arg19[%c0_78, %c0_79] : memref<8x32xf32, #tpu.memory_space<vmem>>, vector<8x32xf32>
    tpu.vector_store %arg19[%c0_78, %c0_79], %158 {strides = array<i32>} : memref<8x32xf32, #tpu.memory_space<vmem>>, vector<8x32xf32>,
    %c1_i32 = arith.constant 1 : i32
    %160 = arith.cmpi eq, %arg1, %c1_i32 : i32
    %161 = arith.extui %160 : i1 to i32
    %c0_i32_80 = arith.constant 0 : i32
    %162 = arith.cmpi ne, %161, %c0_i32_80 : i32
    scf.if %162 {
      %c0_81 = arith.constant 0 : index
      %c0_82 = arith.constant 0 : index
      %c0_83 = arith.constant 0 : index
      %163 = vector.load %arg18[%c0_81, %c0_82, %c0_83] : memref<1x8x32xf32, #tpu.memory_space<vmem>>, vector<1x8x32xf32>
      %164 = vector.shape_cast %163 : vector<1x8x32xf32> to vector<8x32xf32>
      %165 = vector.shape_cast %158 : vector<8x32xf32> to vector<1x8x32xf32>
      tpu.vector_store %arg18[%c0_81, %c0_82, %c0_83], %165 {strides = array<i32>} : memref<1x8x32xf32, #tpu.memory_space<vmem>>, vector<1x8x32xf32>,
    } else {
    }
    return
  }
  func.func @transform_0(%arg0: i32, %arg1: i32) -> (i32, i32, i32) {
    %c0_i32 = arith.constant 0 : i32
    %c0_i32_0 = arith.constant 0 : i32
    %c0_i32_1 = arith.constant 0 : i32
    return %arg0, %c0_i32, %c0_i32_0 : i32, i32, i32
  }
  func.func @transform_1(%arg0: i32, %arg1: i32) -> (i32, i32, i32) {
    %c0_i32 = arith.constant 0 : i32
    %c0_i32_0 = arith.constant 0 : i32
    %c0_i32_1 = arith.constant 0 : i32
    return %arg0, %c0_i32, %c0_i32_0 : i32, i32, i32
  }
  func.func @transform_2(%arg0: i32, %arg1: i32) -> (i32, i32, i32) {
    %c0_i32 = arith.constant 0 : i32
    %c0_i32_0 = arith.constant 0 : i32
    %c0_i32_1 = arith.constant 0 : i32
    return %arg1, %c0_i32, %c0_i32_0 : i32, i32, i32
  }
  func.func @transform_3(%arg0: i32, %arg1: i32) -> (i32, i32, i32) {
    %c0_i32 = arith.constant 0 : i32
    %c0_i32_0 = arith.constant 0 : i32
    %c0_i32_1 = arith.constant 0 : i32
    return %arg1, %c0_i32, %c0_i32_0 : i32, i32, i32
  }
  func.func @transform_4(%arg0: i32, %arg1: i32) -> (i32, i32, i32) {
    %c0_i32 = arith.constant 0 : i32
    %c0_i32_0 = arith.constant 0 : i32
    %c0_i32_1 = arith.constant 0 : i32
    return %arg1, %c0_i32, %c0_i32_0 : i32, i32, i32
  }
  func.func @transform_5(%arg0: i32, %arg1: i32) -> (i32, i32, i32) {
    %c0_i32 = arith.constant 0 : i32
    %c0_i32_0 = arith.constant 0 : i32
    %c0_i32_1 = arith.constant 0 : i32
    return %arg1, %c0_i32, %c0_i32_0 : i32, i32, i32
  }
  func.func @transform_6(%arg0: i32, %arg1: i32) -> (i32, i32, i32) {
    %c0_i32 = arith.constant 0 : i32
    %c0_i32_0 = arith.constant 0 : i32
    %c0_i32_1 = arith.constant 0 : i32
    return %arg1, %c0_i32, %c0_i32_0 : i32, i32, i32
  }
  func.func @transform_7(%arg0: i32, %arg1: i32) -> (i32, i32, i32) {
    %c0_i32 = arith.constant 0 : i32
    %c0_i32_0 = arith.constant 0 : i32
    %c0_i32_1 = arith.constant 0 : i32
    return %arg1, %c0_i32, %c0_i32_0 : i32, i32, i32
  }
  func.func @transform_8(%arg0: i32, %arg1: i32) -> (i32, i32, i32) {
    %c0_i32 = arith.constant 0 : i32
    %c0_i32_0 = arith.constant 0 : i32
    %c0_i32_1 = arith.constant 0 : i32
    return %arg1, %c0_i32, %c0_i32_0 : i32, i32, i32
  }
  func.func @transform_9(%arg0: i32, %arg1: i32) -> (i32, i32, i32) {
    %c0_i32 = arith.constant 0 : i32
    %c0_i32_0 = arith.constant 0 : i32
    %c0_i32_1 = arith.constant 0 : i32
    return %arg1, %c0_i32, %c0_i32_0 : i32, i32, i32
  }
  func.func @transform_10(%arg0: i32, %arg1: i32) -> (i32, i32, i32) {
    %c0_i32 = arith.constant 0 : i32
    %c0_i32_0 = arith.constant 0 : i32
    %c0_i32_1 = arith.constant 0 : i32
    return %arg1, %c0_i32, %c0_i32_0 : i32, i32, i32
  }
  func.func @transform_11(%arg0: i32, %arg1: i32) -> (i32, i32, i32) {
    %c0_i32 = arith.constant 0 : i32
    %c0_i32_0 = arith.constant 0 : i32
    %c0_i32_1 = arith.constant 0 : i32
    return %arg1, %c0_i32, %c0_i32_0 : i32, i32, i32
  }
  func.func @transform_12(%arg0: i32, %arg1: i32) -> (i32, i32, i32) {
    %c0_i32 = arith.constant 0 : i32
    %c0_i32_0 = arith.constant 0 : i32
    %c0_i32_1 = arith.constant 0 : i32
    return %arg1, %c0_i32, %c0_i32_0 : i32, i32, i32
  }
  func.func @transform_13(%arg0: i32, %arg1: i32) -> (i32, i32, i32) {
    %c0_i32 = arith.constant 0 : i32
    %c0_i32_0 = arith.constant 0 : i32
    %c0_i32_1 = arith.constant 0 : i32
    return %arg1, %c0_i32, %c0_i32_0 : i32, i32, i32
  }
  func.func @transform_14(%arg0: i32, %arg1: i32) -> (i32, i32, i32) {
    %c0_i32 = arith.constant 0 : i32
    %c0_i32_0 = arith.constant 0 : i32
    %c0_i32_1 = arith.constant 0 : i32
    return %arg1, %c0_i32, %c0_i32_0 : i32, i32, i32
  }
  func.func @transform_15(%arg0: i32, %arg1: i32) -> (i32, i32, i32) {
    %c0_i32 = arith.constant 0 : i32
    %c0_i32_0 = arith.constant 0 : i32
    %c0_i32_1 = arith.constant 0 : i32
    return %arg1, %c0_i32, %c0_i32_0 : i32, i32, i32
  }
  func.func @transform_16(%arg0: i32, %arg1: i32) -> (i32, i32, i32) {
    %c0_i32 = arith.constant 0 : i32
    %c0_i32_0 = arith.constant 0 : i32
    %c0_i32_1 = arith.constant 0 : i32
    return %arg0, %c0_i32, %c0_i32_0 : i32, i32, i32
  }
}

</mosaic_0001>

<bundles_post_ra>
// kernel: encoder_forward.1
= control target key start
LH: loop header
LB: loop body
LE: loop exit
PB: predicated region body
PF: predicated region fallthrough
CT: control target
= control target key end

     0   :  { %s5197_s0 = inlined_call_operand.vmem [shape: f32[2,8,32], index: 0, kind: input, shape index: {}]   ;;  %s5198_s1 = inlined_call_operand.vmem [shape: f32[2,1,8], index: 1, kind: input, shape index: {}]   ;;  %s5199_s2 = inlined_call_operand.vmem [shape: f32[2,32,32], index: 2, kind: input, shape index: {}]   ;;  %s5200_s3 = inlined_call_operand.vmem [shape: f32[2,1,32], index: 3, kind: input, shape index: {}]   ;;  %s5201_s4 = inlined_call_operand.vmem [shape: f32[2,32,32], index: 4, kind: input, shape index: {}]   ;;  %s5202_s5 = inlined_call_operand.vmem [shape: f32[2,1,32], index: 5, kind: input, shape index: {}]   ;;  %s5203_s6 = inlined_call_operand.vmem [shape: f32[2,32,32], index: 6, kind: input, shape index: {}]   ;;  %s5204_s7 = inlined_call_operand.vmem [shape: f32[2,1,32], index: 7, kind: input, shape index: {}]   ;;  %s5205_s8 = inlined_call_operand.vmem [shape: f32[2,32,32], index: 8, kind: input, shape index: {}]   ;;  %s5206_s9 = inlined_call_operand.vmem [shape: f32[2,1,32], index: 9, kind: input, shape index: {}]   ;;  %s5207_s10 = inlined_call_operand.vmem [shape: f32[2,32,2048], index: 10, kind: input, shape index: {}]   ;;  %s5208_s11 = inlined_call_operand.vmem [shape: f32[2,1,2048], index: 11, kind: input, shape index: {}]   ;;  %s5209_s12 = inlined_call_operand.vmem [shape: f32[2,2048,32], index: 12, kind: input, shape index: {}]   ;;  %s5210_s13 = inlined_call_operand.vmem [shape: f32[2,1,32], index: 13, kind: input, shape index: {}]   ;;  %s5211_s14 = inlined_call_operand.vmem [shape: f32[2,1,32], index: 14, kind: input, shape index: {}]   ;;  %s5212_s15 = inlined_call_operand.vmem [shape: f32[2,1,32], index: 15, kind: input, shape index: {}]   ;;  %s5213_s16 = inlined_call_operand.hbm [shape: f32[2,8,32], index: 16, kind: output, shape index: {}]  }
   0x1   :  { %5230 = sst [smem:[#allocation20_spill]] %s5197_s0 }
   0x2   :  { %5231 = sst [smem:[#allocation21_spill]] %s5198_s1 }
   0x3   :  { %5232 = sst [smem:[#allocation22_spill]] %s5199_s2 }
   0x4   :  { %5233 = sst [smem:[#allocation23_spill]] %s5200_s3 }
   0x5   :  { %5234 = sst [smem:[#allocation24_spill]] %s5201_s4 }
   0x6   :  { %5235 = sst [smem:[#allocation25_spill]] %s5203_s6 }
   0x7   :  { %5236 = sst [smem:[#allocation26_spill]] %s5205_s8 }
   0x8   :  { %5237 = sst [smem:[#allocation27_spill]] %s5206_s9 }
   0x9   :  { %5238 = sst [smem:[#allocation28_spill]] %s5207_s10 }
   0xa   :  { %5239 = sst [smem:[#allocation29_spill]] %s5211_s14 }
   0xb   :  { %5240 = sst [smem:[#allocation30_spill]] %s5212_s15 }
   0xc   :  { %5241 = sst [smem:[#allocation31_spill]] %s5213_s16 }
   0xd   :  { %21 = vsyncpa [#allocation4], 0 }
   0xe   :  { %23 = vsyncpa [#allocation4 + $0x1], 0  ;;  %s4395_s21 = smov 0   ;;  %s4397_s22 = smov 0  }
   0xf   :  { %s4399_s23 = smov 0   ;;  %s4401_s24 = smov 0  }
  0x10   :  { %s4403_s25 = smov 0   ;;  %s4405_s26 = smov 0  }
  0x11   :  { %s4407_s27 = smov 0   ;;  %s4409_s28 = smov 0  }
  0x12 LB: > { %5242 = sst [smem:[#allocation6_spill]] %s4271_s21  ;;  %s3646_s29 = sadd.s32 4294967295, %s4299_s28   ;;  %s4299_s28 = sphi %s4409_s28, %s29_s28   ;;  %s4295_s27 = sphi %s4407_s27, %s5296_s27   ;;  %s4291_s26 = sphi %s4405_s26, %s5295_s26   ;;  %s4287_s25 = sphi %s4403_s25, %s5294_s25   ;;  %s4283_s24 = sphi %s4401_s24, %s5293_s24   ;;  %s4279_s23 = sphi %s4399_s23, %s5292_s23   ;;  %s4275_s22 = sphi %s4397_s22, %s5291_s22   ;;  %s4271_s21 = sphi %s4395_s21, %s5290_s21  }
  0x13   : > { %5243 = sst [smem:[#allocation7_spill]] %s4275_s22  ;;  %s3647_s30 = sadd.s32 4294967294, %s4299_s28  }
  0x14   : > { %5244 = sst [smem:[#allocation8_spill]] %s4279_s23  ;;  %s38_s0 = sadd.s32 1, %s4291_s26 }
  0x15   : > { %5245 = sst [smem:[#allocation9_spill]] %s4283_s24  ;;  %p39_p0 = scmp.ge.s32.totalorder %s38_s0, 2 }
  0x16   : > { %5246 = sst [smem:[#allocation10_spill]] %s4287_s25  ;;  %s41_s17 = sadd.s32 1, %s4295_s27 }
  0x17   : > { %5247 = sst [smem:[#allocation11_spill]] %s4291_s26  ;;  %p474_p1 = scmp.ne.s32.totalorder %s4279_s23, %s4275_s22 }
  0x18   : > { %5248 = sst [smem:[#allocation12_spill]] %s4295_s27  ;;  %p475_p2 = scmp.eq.s32.totalorder %s3646_s29, 3 }
  0x19   : > { %5249 = sst [smem:[#allocation13_spill]] %s4299_s28  ;;  %s5298_s0 = smov (%p39_p0, %s38_s0), 0 }
  0x1a   : > { %5250 = sst [smem:[#allocation14_spill]] %s5298_s0  ;;  %s5300_s17 = smov (!%p39_p0, %s41_s17), %s4295_s27 }
  0x1b   : > { %p4444_p3 = por %p475_p2, %p474_p1  ;;  %p480_p4 = scmp.ne.s32.totalorder %s4275_s22, %s4271_s21 }
  0x1c   : > { %p43_p5 = scmp.ge.s32.totalorder %s5300_s17, 2  ;;  %p481_p6 = scmp.eq.s32.totalorder %s3647_s30, 3 }
  0x1d   : > { %s5251_s18 = scalar_select %p4444_p3, 1, 0 }
  0x1e   : > { %p3650_p7 = scmp.ge.s32.totalorder %s4299_s28, 1  ;;  %p609_p8 = scmp.lt.s32.totalorder %s4299_s28, 5 }
  0x1f   : > { %5252 = sst [smem:[#allocation15_spill]] %s5251_s18  ;;  %s5302_s17 = smov (%p43_p5, %s5300_s17), 0 }
  0x20   : > { %5253 = sst [smem:[#allocation16_spill]] %s5302_s17  ;;  %p4454_p9 = por %p481_p6, %p480_p4 }
  0x21   : > { %p610_p10 = pnand %p3650_p7, %p609_p8  ;;  %s461_s20 = ssub.s32 %s4295_s27, %s5302_s17 }
  0x22   : > { %s5254_s19 = scalar_select %p4454_p9, 1, 0 }
  0x23   : > { %s464_s29 = sadd.s32 1, %s4279_s23  ;;  %p462_p11 = scmp.eq.s32.totalorder %s461_s20, 0 }
  0x24   : > { %5255 = sst [smem:[#allocation17_spill]] %s5254_s19  ;;  %613 = sbr.rel (%p610_p10) target bundleno = 2716 (0xa9c), region = 84 }
  0x25   : > { %s4462_s0 = scalar_select %p462_p11, %s4279_s23, %s464_s29  }
  0x27   : > { %5256 = sst [smem:[#allocation18_spill]] %s4462_s0 }
  0x29   : > { %s5218_s30 = sand.u32 1, %s4275_s22   ;;  %p716_p12 = scmp.lt.s32.totalorder %s4287_s25, 1 }
  0x2a   : > { %s4468_s26 = sshll.u32 %s5218_s30, 3  ;;  %p723_p13 = scmp.lt.s32.totalorder %s4283_s24, 1 }
  0x2b   : > { %s4472_s19 = scalar_select %p716_p12, %s4287_s25, 1 }
  0x2c   : > { %s4475_s20 = scalar_select %p723_p13, %s4283_s24, 1 }
  0x2d   : > { %5257 = sst [smem:[#allocation19_spill]] %s4472_s19  ;;  %s3652_s29 = sshll.u32 %s4472_s19, 3 }
  0x2e   : > { %s5259_s21 = sld [smem:[#allocation20_spill]]  ;;  %s3704_s16 = sshll.u32 %s4475_s20, 5 }
  0x2f   : > { %s5260_s2 = sld [smem:[#allocation22_spill]]  ;;  %s3708_s23 = sshll.u32 %s4475_s20, 9 }
  0x30   : > { %s5262_s4 = sld [smem:[#allocation24_spill]]  ;;  %s771_s24 = scalar_lea.vmem %s5210_s13, %s4475_s20 }
  0x31   : > { %s5263_s6 = sld [smem:[#allocation25_spill]] }
  0x32   : > { %s5264_s8 = sld [smem:[#allocation26_spill]] }
  0x33   : > { %s5266_s10 = sld [smem:[#allocation28_spill]] }
  0x34   : > { %s719_s28 = scalar_lea.vmem %s5259_s21, %s3652_s29  ;;  %s3663_s21 = sshll.u32 %s4475_s20, 4 }
  0x35   : > { %s4489_s25 = scalar_lea.vmem %s5260_s2, %s3704_s16  ;;  %s4532_s1 = scalar_lea.vmem %s5208_s11, %s3663_s21 }
  0x36   : > { %s4498_s30 = scalar_lea.vmem %s5262_s4, %s3704_s16  ;;  %s3709_s2 = sshll.u32 %s4475_s20, 11 }
  0x37   : > { %s4507_s18 = scalar_lea.vmem %s5263_s6, %s3704_s16  ;;  %s4542_s17 = scalar_lea.vmem %s5209_s12, %s3709_s2 }
  0x38   : > { %s4516_s27 = scalar_lea.vmem %s5264_s8, %s3704_s16  ;;  %s5267_s3 = sld [smem:[#allocation29_spill]] }
  0x39   : > { %s4527_s29 = scalar_lea.vmem %s5266_s10, %s3708_s23  ;;  %s5268_s9 = sld [smem:[#allocation30_spill]] }
  0x3a   : > { %s715_s21 = scalar_lea.vmem [#allocation3], %s4468_s26  ;;  %s5269_s22 = sld [smem:[#allocation9_spill]] }
  0x3e   : > { %s774_s0 = scalar_lea.vmem %s5267_s3, %s4475_s20 }
  0x3f   : > { %s777_s6 = scalar_lea.vmem %s5268_s9, %s4475_s20 }
  0x40   : > { %p3666_p0 = scmp.ne.s32.totalorder %s5269_s22, 0 }
  0x42   : > { %781 = sbr.rel (%p3666_p0) target bundleno = 73 (0x49), region = 88 }
  0x47   : > { %v782_v0 = vld [vmem:[%s719_s28] sm:$0xff]  ;;  %vm783_vm0 = vcmask 261120  }
  0x48   : > { %784 = vst.msk [vmem:[#allocation2] sm:$0xff] %vm783_vm0, %v782_v0 }
  0x49 PF: > { %v875_v1 = vld [vmem:[%s4498_s30 + $0x18] sm:$0xff]  ;;  %v4301_v3 = vmov 0.0   ;;  %v874_v4 = vld [vmem:[%s4498_s30 + $0x10] sm:$0xff]  ;;  %v873_v6 = vld [vmem:[%s4498_s30 + $0x8] sm:$0xff]  ;;  %vm798_vm1 = vcmask 261120   ;;  %vm4302_vm2 = vmmov 0   ;;  %s5270_s10 = scalar_lea.vmem %s5202_s5, %s4475_s20  ;;  %s5276_s9 = scalar_lea.vmem %s5204_s7, %s4475_s20 }
  0x4a   : > { %v790_v2 = vld [vmem:[%s4489_s25 + $0x18] sm:$0xff]  ;;  %4037 = vmatprep.subr.mxu1 %v4301_v3  ;;  %4026 = vmatprep.subr.mxu0 %v4301_v3  ;;  %v789_v5 = vld [vmem:[%s4489_s25 + $0x10] sm:$0xff]  ;;  %v788_v7 = vld [vmem:[%s4489_s25 + $0x8] sm:$0xff]  ;;  %s5271_s19 = sld [smem:[#allocation23_spill]]  ;;  %vm1034_vm3 = vcmask 64512   ;;  %s4303_s15 = smov 120  }
  0x4b   : > { %4038 = vmatpush3.msra.mxu1 %v875_v1  ;;  %4027 = vmatpush3.msra.mxu0 %v790_v2  ;;  %v872_v8 = vld [vmem:[%s4498_s30] sm:$0xff]  ;;  %s4304_s2 = smov 112   ;;  %s4305_s14 = smov 104   ;;  %v956_v19 = vld [vmem:[%s4507_s18 + $0x18] sm:$0xff]  ;;  %v955_v20 = vld [vmem:[%s4507_s18 + $0x10] sm:$0xff]  ;;  %vm1722_vm4 = vcmask 130048  }
  0x4c   : > { %4039 = vmatprep.subr.mxu1 %v4301_v3  ;;  %4028 = vmatprep.subr.mxu0 %v4301_v3  ;;  %v787_v10 = vld [vmem:[%s4489_s25] sm:$0xff]  ;;  %s5273_s16 = sld [smem:[#allocation19_spill]]  ;;  %v954_v21 = vld [vmem:[%s4507_s18 + $0x8] sm:$0xff]  ;;  %s4307_s25 = smov 16   ;;  %vm1724_vm5 = vcmask 195584  }
  0x4d   : > { %4040 = vmatpush3.msra.mxu1 %v874_v4  ;;  %4029 = vmatpush3.msra.mxu0 %v789_v5  ;;  %v3669_v11 = vld [vmem:[%s5270_s10] ss:$0 sm:$0xff]  ;;  %s5274_s23 = sld [smem:[#allocation21_spill]]  ;;  %s4306_s10 = smov 8  }
  0x4e   : > { %4041 = vmatprep.subr.mxu1 %v4301_v3  ;;  %4030 = vmatprep.subr.mxu0 %v4301_v3  ;;  %v953_v22 = vld [vmem:[%s4507_s18] sm:$0xff]  ;;  %s5281_s3 = sld [smem:[#allocation9_spill]] }
  0x4f   : > { %4042 = vmatpush3.msra.mxu1 %v873_v6  ;;  %4031 = vmatpush3.msra.mxu0 %v788_v7  ;;  %v4567_v9 = vld [vmem:[#allocation2] sm:$0xff] }
  0x50   : > { %4043 = vmatprep.subr.mxu1 %v4301_v3  ;;  %4045 = vmatprep.mubr.msk.f32.mxu1 %vm4302_vm2, %v4301_v3  ;;  %s5272_s30 = scalar_lea.vmem %s5271_s19, %s4475_s20  ;;  %v3671_v35 = vld [vmem:[%s5276_s9] ss:$0 sm:$0xff] }
  0x51   : > { %4044 = vmatpush3.msra.mxu1 %v872_v8  ;;  %4032 = vmatprep.subr.mxu0 %v4301_v3  ;;  %v3667_v13 = vld [vmem:[%s5272_s30] ss:$0 sm:$0xff]  ;;  %s5277_s30 = sld [smem:[#allocation27_spill]] }
  0x52   : > { %4046 = vmatmul.mubr.msk.f32.vlgmr.msra.gmra.mxu1 %vm798_vm1, %v4567_v9  ;;  %4033 = vmatpush3.msra.mxu0 %v787_v10 }
  0x53   : > { %4034 = vmatprep.mubr.msk.f32.mxu0 %vm4302_vm2, %v4301_v3  ;;  %4059 = vmatprep.subr.mxu1 %v4301_v3  ;;  %s5275_s18 = scalar_lea.vmem %s5274_s23, %s5273_s16 }
  0x54   : > { %4035 = vmatmul.mubr.msk.f32.vlgmr.msra.gmra.mxu0 %vm798_vm1, %v4567_v9  ;;  %4061 = vmatprep.mubr.msk.f32.mxu1 %vm4302_vm2, %v4301_v3  ;;  %v3675_v26 = vld [vmem:[%s5275_s18] ss:$0 sm:$0xff]  ;;  %p3699_p1 = scmp.ne.s32.totalorder %s5281_s3, 1 }
  0x55   : > { %4048 = vmatprep.subr.mxu0 %v4301_v3  ;;  %4056 = vmatprep.mubr.msk.f32.mxu0 %vm4302_vm2, %v4301_v3 }
  0x56   : > { %4049 = vmatpush3.msra.mxu0 %v956_v19 }
  0x57   : > { %4050 = vmatprep.subr.mxu0 %v4301_v3 }
  0x58   : > { %4051 = vmatpush3.msra.mxu0 %v955_v20 }
  0x59   : > { %4052 = vmatprep.subr.mxu0 %v4301_v3 }
  0x5a   : > { %4053 = vmatpush3.msra.mxu0 %v954_v21 }
  0x5b   : > { %4054 = vmatprep.subr.mxu0 %v4301_v3 }
  0x5c   : > { %4055 = vmatpush3.msra.mxu0 %v953_v22 }
  0x5d   : > { %4057 = vmatmul.mubr.msk.f32.vlgmr.msra.gmra.mxu0 %vm798_vm1, %v4567_v9  ;;  %4079 = vmatprep.subr.mxu0 %v4301_v3 }
  0x5e   : > { %4081 = vmatprep.mubr.msk.f32.mxu0 %vm4302_vm2, %v4301_v3 }
 0x112   : > { %v949_v12 = vpop.f32.mrf.mxu1 }
 0x113   : > { %v950_v14 = vadd.f32 %v3669_v11, %v949_v12 }
 0x114   : > { %v868_v15 = vpop.f32.mrf.mxu0  ;;  %v4047_v16 = vpop.f32.mrf.mxu1 }
 0x115   : > { %v869_v17 = vadd.f32 %v3667_v13, %v868_v15  ;;  %1206 = vrot.lane.b32.xlu1 %v950_v14, %s4303_s15  ;;  %4060 = vmatpush3.xpose.msk.msra.mxu1 %vm1034_vm3, %v950_v14 }
 0x116   : > { %v4036_v18 = vpop.f32.mrf.mxu0  ;;  %4064 = vmatprep.subr.mxu1 %v4301_v3 }
 0x118   : > { %4062 = vmatmul.mubr.msk.f32.vlgmr.msra.gmra.mxu1 %vm1034_vm3, %v869_v17 }
 0x119   : > { %1204 = vrot.lane.b32.xlu1 %v869_v17, %s4303_s15  ;;  %4066 = vmatprep.mubr.msk.f32.mxu1 %vm4302_vm2, %v4301_v3 }
 0x11d   : > { %1373 = vrot.lane.b32.xlu1 %v869_v17, %s4304_s2  ;;  %v1030_v36 = vpop.f32.mrf.mxu0 }
 0x11e   : > { %v4630_v37 = vadd.f32 %v3671_v35, %v1030_v36  ;;  %v1727_v35 = vld [vmem:[%s4516_s27 + $0x8] sm:$0xff]  ;;  %v1726_v36 = vld [vmem:[%s4516_s27] sm:$0xff] }
 0x11f   : > { %v4058_v38 = vpop.f32.mrf.mxu0 }
 0x120   : > { %4065 = vmatpush3.msra.mxu1 %v4630_v37  ;;  %v1862_v38 = vld [vmem:[%s4527_s29 + $0x198] sm:$0xff] }
 0x121   : > { %1543 = vrot.lane.b32.xlu1 %v950_v14, %s4305_s14  ;;  %4069 = vmatprep.subr.mxu1 %v4301_v3 }
 0x125   : > { %1541 = vrot.lane.b32.xlu1 %v869_v17, %s4305_s14 }
 0x187   : > { %v1207_v39 = vpop.permute.xlu1 %1206 }
 0x18b   : > { %v1205_v40 = vpop.permute.xlu1 %1204 }
 0x18f   : > { %v1374_v41 = vpop.permute.xlu1 %1373 }
 0x193   : > { %v1544_v44 = vpop.permute.xlu1 %1543 }
 0x197   : > { %v1542_v45 = vpop.permute.xlu1 %1541 }
 0x1d8   : > { %v1107_v23 = vpop.f32.mrf.mxu1 }
 0x1d9   : > { %v1111_v24 = vmul.f32 0.35355338, %v1107_v23 }
 0x1da   : > { %v4063_v25 = vpop.f32.mrf.mxu1 }
 0x1db   : > { %v1112_v27 = vfloor.f32 %v1111_v24 }
 0x1dd   : > { %v1119_v28 = vadd.f32 %v3675_v26, %v1112_v27 }
 0x1df   : > { %v1120_v29 = vsel %vm1034_vm3, %v1119_v28, -inf }
 0x1e0   : > { %1121 = vmax.xlane.f32.xlu0 %v1120_v29 }
 0x269   : > { %v1122_v30 = vpop.xlane.xlu0 %1121 }
 0x26a   : > { %v1123_v31 = vsub.f32 %v1119_v28, %v1122_v30 }
 0x26c   : > { %v1124_v32 = vmul.f32 1.442695, %v1123_v31 }
 0x26e   : > { %4189 = vpow2.f32 %v1124_v32 }
 0x27b   : > { %v4190_v33 = vpop.eup %4189 }
 0x27c   : > { %v1126_v34 = vsel %vm1034_vm3, %v4190_v33, 0.0 }
 0x27d   : > { %1127 = vadd.xlane.f32.xlu0 %v1126_v34  ;;  %v1728_v34 = vld [vmem:[%s4516_s27 + $0x10] sm:$0xff] }
 0x293   : > { %1375 = vrot.lane.b32.xlu0 %v950_v14, %s4304_s2 }
 0x306   : > { %v1128_v42 = vpop.xlane.xlu0 %1127 }
 0x307   : > { %4191 = vrcp.f32 %v1128_v42 }
 0x30a   : > { %v1376_v43 = vpop.permute.xlu0 %1375 }
 0x30b   : > { %4080 = vmatpush3.xpose.msk.msra.mxu0 %vm1034_vm3, %v1376_v43 }
 0x30c   : > { %4089 = vmatprep.subr.mxu0 %v4301_v3 }
 0x30e   : > { %4082 = vmatmul.mubr.msk.f32.vlgmr.msra.gmra.mxu0 %vm1034_vm3, %v1374_v41  ;;  %v1843_v41 = vld [vmem:[%s4527_s29 + $0x100] sm:$0xff] }
 0x30f   : > { %4090 = vmatpush3.xpose.msk.msra.mxu0 %vm1034_vm3, %v1544_v44  ;;  %4091 = vmatprep.mubr.msk.f32.mxu0 %vm4302_vm2, %v4301_v3 }
 0x310   : > { %4099 = vmatprep.subr.mxu0 %v4301_v3 }
 0x312   : > { %4092 = vmatmul.mubr.msk.f32.vlgmr.msra.gmra.mxu0 %vm1034_vm3, %v1542_v45 }
 0x313   : > { %4107 = vmatprep.mubr.msk.f32.mxu0 %vm4302_vm2, %v4301_v3 }
 0x314   : > { %v4192_v46 = vpop.eup %4191 }
 0x315   : > { %v1130_v47 = vmul.f32 %v4192_v46, %v4190_v33  ;;  %v1729_v33 = vld [vmem:[%s4516_s27 + $0x18] sm:$0xff]  ;;  %s4308_s27 = smov 24  }
 0x316   : > { %4100 = vmatpush3.msra.mxu0 %v1729_v33  ;;  %v1835_v33 = vld [vmem:[%s4527_s29 + $0xc0] sm:$0xff] }
 0x317   : > { %4067 = vmatmul.mubr.msk.f32.vlgmr.msra.gmra.mxu1 %vm1034_vm3, %v1130_v47  ;;  %4101 = vmatprep.subr.mxu0 %v4301_v3 }
 0x318   : > { %4070 = vmatpush3.xpose.msk.msra.mxu1 %vm1034_vm3, %v1207_v39  ;;  %4071 = vmatprep.mubr.msk.f32.mxu1 %vm4302_vm2, %v4301_v3  ;;  %v1859_v39 = vld [vmem:[%s4527_s29 + $0x180] sm:$0xff] }
 0x319   : > { %4074 = vmatprep.subr.mxu1 %v4301_v3  ;;  %4102 = vmatpush3.msra.mxu0 %v1728_v34  ;;  %v1837_v34 = vld [vmem:[%s4527_s29 + $0xd0] sm:$0xff] }
 0x31a   : > { %4103 = vmatprep.subr.mxu0 %v4301_v3 }
 0x31b   : > { %4072 = vmatmul.mubr.msk.f32.vlgmr.msra.gmra.mxu1 %vm1034_vm3, %v1205_v40  ;;  %4104 = vmatpush3.msra.mxu0 %v1727_v35  ;;  %v1844_v40 = vld [vmem:[%s4527_s29 + $0x108] sm:$0xff] }
 0x31c   : > { %4076 = vmatprep.mubr.msk.f32.mxu1 %vm4302_vm2, %v4301_v3  ;;  %4105 = vmatprep.subr.mxu0 %v4301_v3  ;;  %v1820_v35 = vld [vmem:[%s4527_s29 + $0x48] sm:$0xff] }
 0x31d   : > { %4106 = vmatpush3.msra.mxu0 %v1726_v36  ;;  %v1822_v36 = vld [vmem:[%s4527_s29 + $0x58] sm:$0xff] }
 0x31e   : > { %2057 = vmatprep.subr.mxu0 %v1862_v38  ;;  %v1821_v38 = vld [vmem:[%s4527_s29 + $0x50] sm:$0xff] }
 0x3ce   : > { %v1447_v48 = vpop.f32.mrf.mxu0 }
 0x3cf   : > { %v1451_v49 = vmul.f32 0.35355338, %v1447_v48 }
 0x3d0   : > { %v4083_v50 = vpop.f32.mrf.mxu0 }
 0x3d1   : > { %v1452_v51 = vfloor.f32 %v1451_v49 }
 0x3d2   : > { %v1615_v52 = vpop.f32.mrf.mxu0 }
 0x3d3   : > { %v1453_v53 = vadd.f32 %v3675_v26, %v1452_v51  ;;  %v1619_v58 = vmul.f32 0.35355338, %v1615_v52 }
 0x3d4   : > { %v4093_v54 = vpop.f32.mrf.mxu0 }
 0x3d5   : > { %v1454_v55 = vsel %vm1034_vm3, %v1453_v53, -inf  ;;  %v1620_v62 = vfloor.f32 %v1619_v58  ;;  %v1830_v58 = vld [vmem:[%s4527_s29 + $0x98] sm:$0xff] }
 0x3d6   : > { %1455 = vmax.xlane.f32.xlu0 %v1454_v55  ;;  %v1846_v55 = vld [vmem:[%s4527_s29 + $0x118] sm:$0xff] }
 0x3d7   : > { %v4654_v56 = vpop.f32.mrf.mxu1  ;;  %v1621_v2 = vadd.f32 %v3675_v26, %v1620_v62  ;;  %v1814_v62 = vld [vmem:[%s4527_s29 + $0x18] sm:$0xff] }
 0x3d9   : > { %v4068_v57 = vpop.f32.mrf.mxu1  ;;  %v1622_v4 = vsel %vm1034_vm3, %v1621_v2, -inf }
 0x3da   : > { %v1845_v57 = vld [vmem:[%s4527_s29 + $0x110] sm:$0xff] }
 0x3db   : > { %v1278_v59 = vpop.f32.mrf.mxu1 }
 0x3dc   : > { %v1282_v60 = vmul.f32 0.35355338, %v1278_v59  ;;  %v1827_v59 = vld [vmem:[%s4527_s29 + $0x80] sm:$0xff] }
 0x3dd   : > { %v4073_v61 = vpop.f32.mrf.mxu1 }
 0x3de   : > { %v1283_v63 = vfloor.f32 %v1282_v60  ;;  %v1829_v60 = vld [vmem:[%s4527_s29 + $0x90] sm:$0xff]  ;;  %v1812_v61 = vld [vmem:[%s4527_s29 + $0x8] sm:$0xff] }
 0x3e0   : > { %v1284_v0 = vadd.f32 %v3675_v26, %v1283_v63  ;;  %v1811_v63 = vld [vmem:[%s4527_s29] sm:$0xff] }
 0x3e2   : > { %v1285_v1 = vsel %vm1034_vm3, %v1284_v0, -inf }
 0x3e3   : > { %1286 = vmax.xlane.f32.xlu1 %v1285_v1  ;;  %v1864_v1 = vld [vmem:[%s4527_s29 + $0x1a8] sm:$0xff] }
 0x3e7   : > { %1623 = vmax.xlane.f32.xlu1 %v1622_v4 }
 0x45f   : > { %v1456_v5 = vpop.xlane.xlu0 %1455 }
 0x460   : > { %v1457_v6 = vsub.f32 %v1453_v53, %v1456_v5  ;;  %v1861_v53 = vld [vmem:[%s4527_s29 + $0x190] sm:$0xff] }
 0x462   : > { %v1458_v7 = vmul.f32 1.442695, %v1457_v6 }
 0x464   : > { %4193 = vpow2.f32 %v1458_v7 }
 0x46c   : > { %v1287_v8 = vpop.xlane.xlu1 %1286 }
 0x46d   : > { %v1288_v17 = vsub.f32 %v1284_v0, %v1287_v8  ;;  %v1813_v0 = vld [vmem:[%s4527_s29 + $0x10] sm:$0xff] }
 0x46f   : > { %v1289_v18 = vmul.f32 1.442695, %v1288_v17  ;;  %v1831_v17 = vld [vmem:[%s4527_s29 + $0xa0] sm:$0xff] }
 0x470   : > { %v1624_v10 = vpop.xlane.xlu1 %1623 }
 0x471   : > { %v4194_v11 = vpop.eup %4193  ;;  %v1625_v12 = vsub.f32 %v1621_v2, %v1624_v10  ;;  %v1866_v2 = vld [vmem:[%s4527_s29 + $0x1b8] sm:$0xff]  ;;  %v1863_v10 = vld [vmem:[%s4527_s29 + $0x1a0] sm:$0xff] }
 0x472   : > { %v1460_v13 = vsel %vm1034_vm3, %v4194_v11, 0.0 }
 0x473   : > { %v1626_v14 = vmul.f32 1.442695, %v1625_v12  ;;  %1461 = vadd.xlane.f32.xlu0 %v1460_v13  ;;  %v1848_v12 = vld [vmem:[%s4527_s29 + $0x128] sm:$0xff]  ;;  %v1850_v13 = vld [vmem:[%s4527_s29 + $0x138] sm:$0xff] }
 0x475   : > { %4195 = vpow2.f32 %v1626_v14  ;;  %v1847_v14 = vld [vmem:[%s4527_s29 + $0x120] sm:$0xff] }
 0x476   : > { %4197 = vpow2.f32 %v1289_v18  ;;  %v1833_v18 = vld [vmem:[%s4527_s29 + $0xb0] sm:$0xff] }
 0x482   : > { %v4196_v15 = vpop.eup %4195 }
 0x483   : > { %v1628_v16 = vsel %vm1034_vm3, %v4196_v15, 0.0  ;;  %v4198_v19 = vpop.eup %4197 }
 0x484   : > { %1629 = vadd.xlane.f32.xlu1 %v1628_v16  ;;  %v1291_v20 = vsel %vm1034_vm3, %v4198_v19, 0.0  ;;  %v1834_v16 = vld [vmem:[%s4527_s29 + $0xb8] sm:$0xff] }
 0x489   : > { %1297 = vrot.lane.b32.xlu0 %v4630_v37, %s4303_s15  ;;  %s5278_s15 = scalar_lea.vmem %s5277_s30, %s4475_s20 }
 0x48a   : > { %v3686_v4 = vld [vmem:[%s5278_s15] ss:$0 sm:$0xff] }
 0x495   : > { %1465 = vrot.lane.b32.xlu1 %v4630_v37, %s4304_s2 }
 0x4b9   : > { %1292 = vadd.xlane.f32.xlu1 %v1291_v20  ;;  %v1818_v20 = vld [vmem:[%s4527_s29 + $0x38] sm:$0xff] }
 0x4ca   : > { %1633 = vrot.lane.b32.xlu1 %v4630_v37, %s4305_s14  ;;  %v1860_v37 = vld [vmem:[%s4527_s29 + $0x188] sm:$0xff] }
 0x4fc   : > { %v1462_v21 = vpop.xlane.xlu0 %1461 }
 0x500   : > { %v1298_v22 = vpop.permute.xlu0 %1297 }
 0x501   : > { %4075 = vmatpush3.msra.mxu1 %v1298_v22  ;;  %v1817_v22 = vld [vmem:[%s4527_s29 + $0x30] sm:$0xff] }
 0x502   : > { %4084 = vmatprep.subr.mxu1 %v4301_v3 }
 0x50d   : > { %v1630_v23 = vpop.xlane.xlu1 %1629 }
 0x511   : > { %v1466_v24 = vpop.permute.xlu1 %1465 }
 0x542   : > { %v1293_v25 = vpop.xlane.xlu1 %1292 }
 0x543   : > { %4199 = vrcp.f32 %v1293_v25  ;;  %v1867_v25 = vld [vmem:[%s4527_s29 + $0x1c0] sm:$0xff] }
 0x544   : > { %4201 = vrcp.f32 %v1462_v21  ;;  %v1815_v21 = vld [vmem:[%s4527_s29 + $0x20] sm:$0xff] }
 0x545   : > { %4203 = vrcp.f32 %v1630_v23  ;;  %v1868_v23 = vld [vmem:[%s4527_s29 + $0x1c8] sm:$0xff] }
 0x546   : > { %v1634_v31 = vpop.permute.xlu1 %1633 }
 0x550   : > { %v4200_v26 = vpop.eup %4199 }
 0x551   : > { %v1295_v27 = vmul.f32 %v4200_v26, %v4198_v19  ;;  %v4202_v28 = vpop.eup %4201  ;;  %v1816_v19 = vld [vmem:[%s4527_s29 + $0x28] sm:$0xff]  ;;  %v1869_v26 = vld [vmem:[%s4527_s29 + $0x1d0] sm:$0xff] }
 0x552   : > { %v1464_v29 = vmul.f32 %v4202_v28, %v4194_v11  ;;  %v4204_v30 = vpop.eup %4203  ;;  %v1865_v11 = vld [vmem:[%s4527_s29 + $0x1b0] sm:$0xff]  ;;  %v1854_v28 = vld [vmem:[%s4527_s29 + $0x158] sm:$0xff] }
 0x553   : > { %4077 = vmatmul.mubr.msk.f32.vlgmr.msra.gmra.mxu1 %vm1034_vm3, %v1295_v27  ;;  %v1632_v32 = vmul.f32 %v4204_v30, %v4196_v15  ;;  %v1849_v15 = vld [vmem:[%s4527_s29 + $0x130] sm:$0xff]  ;;  %v1852_v27 = vld [vmem:[%s4527_s29 + $0x148] sm:$0xff] }
 0x554   : > { %4085 = vmatpush3.msra.mxu1 %v1466_v24  ;;  %4086 = vmatprep.mubr.msk.f32.mxu1 %vm4302_vm2, %v4301_v3  ;;  %v1870_v24 = vld [vmem:[%s4527_s29 + $0x1d8] sm:$0xff]  ;;  %v1853_v30 = vld [vmem:[%s4527_s29 + $0x150] sm:$0xff] }
 0x555   : > { %4094 = vmatprep.subr.mxu1 %v4301_v3 }
 0x557   : > { %4087 = vmatmul.mubr.msk.f32.vlgmr.msra.gmra.mxu1 %vm1034_vm3, %v1464_v29  ;;  %v1851_v29 = vld [vmem:[%s4527_s29 + $0x140] sm:$0xff] }
 0x558   : > { %4095 = vmatpush3.msra.mxu1 %v1634_v31  ;;  %4096 = vmatprep.mubr.msk.f32.mxu1 %vm4302_vm2, %v4301_v3  ;;  %v1836_v31 = vld [vmem:[%s4527_s29 + $0xc8] sm:$0xff] }
 0x559   : > { %1986 = vmatprep.subr.mxu1 %v1860_v37  ;;  %v1819_v37 = vld [vmem:[%s4527_s29 + $0x40] sm:$0xff] }
 0x55b   : > { %4097 = vmatmul.mubr.msk.f32.vlgmr.msra.gmra.mxu1 %vm1034_vm3, %v1632_v32  ;;  %v1838_v32 = vld [vmem:[%s4527_s29 + $0xd8] sm:$0xff] }
 0x55c   : > { %2026 = vmatprep.mubr.f32.mxu1 %v4301_v3  ;;  %1987 = vmatpush1.msra.mxu1 %v1859_v39  ;;  %v1872_v39 = vld [vmem:[%s4527_s29 + $0x1e8] sm:$0xff] }
 0x55d   : > { %1988 = vmatprep.subr.mxu1 %v1844_v40  ;;  %v1874_v40 = vld [vmem:[%s4527_s29 + $0x1f8] sm:$0xff] }
 0x55e   : > { %1989 = vmatpush1.msra.mxu1 %v1843_v41  ;;  %v1871_v41 = vld [vmem:[%s4527_s29 + $0x1e0] sm:$0xff] }
 0x613   : > { %v1369_v42 = vpop.f32.mrf.mxu1 }
 0x614   : > { %1710 = vrot.lane.b32.xlu0 %v1369_v42, %s4306_s10  ;;  %v1873_v42 = vld [vmem:[%s4527_s29 + $0x1f0] sm:$0xff] }
 0x615   : > { %v4078_v43 = vpop.f32.mrf.mxu1 }
 0x616   : > { %v1856_v43 = vld [vmem:[%s4527_s29 + $0x168] sm:$0xff] }
 0x617   : > { %v1537_v44 = vpop.f32.mrf.mxu1 }
 0x618   : > { %1714 = vrot.lane.b32.xlu1 %v1537_v44, %s4307_s25  ;;  %v1858_v44 = vld [vmem:[%s4527_s29 + $0x178] sm:$0xff] }
 0x619   : > { %v4088_v45 = vpop.f32.mrf.mxu1 }
 0x61a   : > { %v1855_v45 = vld [vmem:[%s4527_s29 + $0x160] sm:$0xff] }
 0x61b   : > { %v1705_v46 = vpop.f32.mrf.mxu1 }
 0x61c   : > { %1718 = vrot.lane.b32.xlu0 %v1705_v46, %s4308_s27  ;;  %v1857_v46 = vld [vmem:[%s4527_s29 + $0x170] sm:$0xff] }
 0x61d   : > { %v4098_v47 = vpop.f32.mrf.mxu1 }
 0x61e   : > { %v1840_v47 = vld [vmem:[%s4527_s29 + $0xe8] sm:$0xff] }
 0x686   : > { %v1711_v48 = vpop.permute.xlu0 %1710 }
 0x687   : > { %v1721_v50 = vsel %vm1034_vm3, %v4654_v56, %v1711_v48  ;;  %v1828_v56 = vld [vmem:[%s4527_s29 + $0x88] sm:$0xff]  ;;  %v1842_v48 = vld [vmem:[%s4527_s29 + $0xf8] sm:$0xff] }
 0x688   : > { %1990 = vmatprep.subr.mxu1 %v1828_v56  ;;  %v2561_v56 = vld [vmem:[%s4542_s17 + $0x78] sm:$0xff] }
 0x689   : > { %1991 = vmatpush1.msra.mxu1 %v1827_v59  ;;  %v2576_v59 = vld [vmem:[%s4542_s17 + $0xf0] sm:$0xff] }
 0x68a   : > { %v1715_v49 = vpop.permute.xlu1 %1714  ;;  %1992 = vmatprep.subr.mxu1 %v1812_v61  ;;  %v2560_v61 = vld [vmem:[%s4542_s17 + $0x70] sm:$0xff] }
 0x68b   : > { %v1723_v51 = vsel %vm1722_vm4, %v1721_v50, %v1715_v49  ;;  %1993 = vmatpush1.msra.mxu1 %v1811_v63  ;;  %v1839_v49 = vld [vmem:[%s4527_s29 + $0xe0] sm:$0xff]  ;;  %v1841_v50 = vld [vmem:[%s4527_s29 + $0xf0] sm:$0xff]  ;;  %v2607_v63 = vld [vmem:[%s4542_s17 + $0x1e8] sm:$0xff] }
 0x68c   : > { %2128 = vmatprep.subr.mxu1 %v1864_v1  ;;  %v2591_v1 = vld [vmem:[%s4542_s17 + $0x168] sm:$0xff] }
 0x68e   : > { %v1719_v52 = vpop.permute.xlu0 %1718 }
 0x68f   : > { %v1725_v54 = vsel %vm1724_vm5, %v1723_v51, %v1719_v52  ;;  %v1824_v51 = vld [vmem:[%s4527_s29 + $0x68] sm:$0xff]  ;;  %v1826_v52 = vld [vmem:[%s4527_s29 + $0x78] sm:$0xff] }
 0x690   : > { %4108 = vmatmul.mubr.msk.f32.vlgmr.msra.gmra.mxu0 %vm798_vm1, %v1725_v54  ;;  %v1825_v54 = vld [vmem:[%s4527_s29 + $0x70] sm:$0xff] }
 0x691   : > { %2058 = vmatpush1.msra.mxu0 %v1861_v53  ;;  %2097 = vmatprep.mubr.f32.mxu0 %v4301_v3  ;;  %v1823_v53 = vld [vmem:[%s4527_s29 + $0x60] sm:$0xff] }
 0x692   : > { %2059 = vmatprep.subr.mxu0 %v1846_v55  ;;  %v2577_v55 = vld [vmem:[%s4542_s17 + $0xf8] sm:$0xff] }
 0x693   : > { %2060 = vmatpush1.msra.mxu0 %v1845_v57  ;;  %v2609_v57 = vld [vmem:[%s4542_s17 + $0x1f8] sm:$0xff] }
 0x694   : > { %2061 = vmatprep.subr.mxu0 %v1830_v58  ;;  %v2593_v58 = vld [vmem:[%s4542_s17 + $0x178] sm:$0xff] }
 0x695   : > { %2062 = vmatpush1.msra.mxu0 %v1829_v60  ;;  %v2608_v60 = vld [vmem:[%s4542_s17 + $0x1f0] sm:$0xff] }
 0x696   : > { %2063 = vmatprep.subr.mxu0 %v1814_v62  ;;  %v2592_v62 = vld [vmem:[%s4542_s17 + $0x170] sm:$0xff] }
 0x697   : > { %2064 = vmatpush1.msra.mxu0 %v1813_v0  ;;  %v2559_v0 = vld [vmem:[%s4542_s17 + $0x68] sm:$0xff] }
 0x698   : > { %2199 = vmatprep.subr.mxu0 %v1866_v2  ;;  %v2574_v2 = vld [vmem:[%s4542_s17 + $0xe0] sm:$0xff] }
 0x750   : > { %v1806_v5 = vpop.f32.mrf.mxu0 }
 0x751   : > { %v1807_v6 = vadd.f32 %v3686_v4, %v1806_v5  ;;  %v2606_v4 = vld [vmem:[%s4542_s17 + $0x1e0] sm:$0xff] }
 0x752   : > { %v4109_v7 = vpop.f32.mrf.mxu0  ;;  %v2558_v5 = vld [vmem:[%s4542_s17 + $0x60] sm:$0xff] }
 0x753   : > { %v4712_v8 = vadd.f32 %v1807_v6, %v4567_v9  ;;  %v1832_v9 = vld [vmem:[%s4527_s29 + $0xa8] sm:$0xff]  ;;  %v2590_v6 = vld [vmem:[%s4542_s17 + $0x160] sm:$0xff]  ;;  %v2573_v7 = vld [vmem:[%s4542_s17 + $0xd8] sm:$0xff] }
 0x755   : > { %3688 = vmatmul.mubr.msk.f32.vlgmr.msra.gmra.mxu1 %vm798_vm1, %v4712_v8  ;;  %3689 = vmatmul.mubr.msk.f32.vlgmr.msra.gmra.mxu0 %vm798_vm1, %v4712_v8 }
 0x756   : > { %2129 = vmatpush1.msra.mxu1 %v1863_v10  ;;  %2200 = vmatpush1.msra.mxu0 %v1865_v11  ;;  %v2605_v10 = vld [vmem:[%s4542_s17 + $0x1d8] sm:$0xff] }
 0x757   : > { %2130 = vmatprep.subr.mxu1 %v1848_v12  ;;  %2201 = vmatprep.subr.mxu0 %v1850_v13  ;;  %v2557_v11 = vld [vmem:[%s4542_s17 + $0x58] sm:$0xff]  ;;  %v2572_v13 = vld [vmem:[%s4542_s17 + $0xd0] sm:$0xff] }
 0x758   : > { %2131 = vmatpush1.msra.mxu1 %v1847_v14  ;;  %2202 = vmatpush1.msra.mxu0 %v1849_v15  ;;  %v2589_v12 = vld [vmem:[%s4542_s17 + $0x158] sm:$0xff]  ;;  %v2604_v14 = vld [vmem:[%s4542_s17 + $0x1d0] sm:$0xff] }
 0x759   : > { %2132 = vmatprep.subr.mxu1 %v1832_v9  ;;  %2203 = vmatprep.subr.mxu0 %v1834_v16  ;;  %v2556_v15 = vld [vmem:[%s4542_s17 + $0x50] sm:$0xff]  ;;  %v2571_v16 = vld [vmem:[%s4542_s17 + $0xc8] sm:$0xff] }
 0x75a   : > { %2133 = vmatpush1.msra.mxu1 %v1831_v17  ;;  %2204 = vmatpush1.msra.mxu0 %v1833_v18  ;;  %v2588_v9 = vld [vmem:[%s4542_s17 + $0x150] sm:$0xff]  ;;  %v2603_v17 = vld [vmem:[%s4542_s17 + $0x1c8] sm:$0xff] }
 0x75b   : > { %2134 = vmatprep.subr.mxu1 %v1816_v19  ;;  %2205 = vmatprep.subr.mxu0 %v1818_v20  ;;  %v2555_v18 = vld [vmem:[%s4542_s17 + $0x48] sm:$0xff]  ;;  %v2570_v20 = vld [vmem:[%s4542_s17 + $0xc0] sm:$0xff] }
 0x75c   : > { %2135 = vmatpush1.msra.mxu1 %v1815_v21  ;;  %2168 = vmatprep.mubr.f32.mxu1 %v4301_v3  ;;  %v2587_v19 = vld [vmem:[%s4542_s17 + $0x148] sm:$0xff]  ;;  %v2602_v21 = vld [vmem:[%s4542_s17 + $0x1c0] sm:$0xff] }
 0x75d   : > { %2206 = vmatpush1.msra.mxu0 %v1817_v22  ;;  %2239 = vmatprep.mubr.f32.mxu0 %v4301_v3  ;;  %v2554_v22 = vld [vmem:[%s4542_s17 + $0x40] sm:$0xff] }
 0x75e   : > { %3690 = vmatmul.mubr.msk.f32.vlgmr.msra.gmra.mxu1 %vm798_vm1, %v4712_v8  ;;  %3691 = vmatmul.mubr.msk.f32.vlgmr.msra.gmra.mxu0 %vm798_vm1, %v4712_v8 }
 0x75f   : > { %2270 = vmatprep.subr.mxu1 %v1868_v23  ;;  %2341 = vmatprep.subr.mxu0 %v1870_v24  ;;  %v2586_v23 = vld [vmem:[%s4542_s17 + $0x140] sm:$0xff]  ;;  %v2569_v24 = vld [vmem:[%s4542_s17 + $0xb8] sm:$0xff] }
 0x760   : > { %2271 = vmatpush1.msra.mxu1 %v1867_v25  ;;  %2342 = vmatpush1.msra.mxu0 %v1869_v26  ;;  %v2601_v25 = vld [vmem:[%s4542_s17 + $0x1b8] sm:$0xff] }
 0x761   : > { %2272 = vmatprep.subr.mxu1 %v1852_v27  ;;  %2343 = vmatprep.subr.mxu0 %v1854_v28  ;;  %v2553_v26 = vld [vmem:[%s4542_s17 + $0x38] sm:$0xff]  ;;  %v2568_v28 = vld [vmem:[%s4542_s17 + $0xb0] sm:$0xff] }
 0x762   : > { %2273 = vmatpush1.msra.mxu1 %v1851_v29  ;;  %2344 = vmatpush1.msra.mxu0 %v1853_v30  ;;  %v2585_v27 = vld [vmem:[%s4542_s17 + $0x138] sm:$0xff]  ;;  %v2600_v29 = vld [vmem:[%s4542_s17 + $0x1b0] sm:$0xff] }
 0x763   : > { %2274 = vmatprep.subr.mxu1 %v1836_v31  ;;  %2345 = vmatprep.subr.mxu0 %v1838_v32  ;;  %v2552_v30 = vld [vmem:[%s4542_s17 + $0x30] sm:$0xff]  ;;  %v2567_v32 = vld [vmem:[%s4542_s17 + $0xa8] sm:$0xff] }
 0x764   : > { %2275 = vmatpush1.msra.mxu1 %v1835_v33  ;;  %2346 = vmatpush1.msra.mxu0 %v1837_v34  ;;  %v2584_v31 = vld [vmem:[%s4542_s17 + $0x130] sm:$0xff]  ;;  %v2599_v33 = vld [vmem:[%s4542_s17 + $0x1a8] sm:$0xff] }
 0x765   : > { %2276 = vmatprep.subr.mxu1 %v1820_v35  ;;  %2347 = vmatprep.subr.mxu0 %v1822_v36  ;;  %v2551_v34 = vld [vmem:[%s4542_s17 + $0x28] sm:$0xff]  ;;  %v2566_v36 = vld [vmem:[%s4542_s17 + $0xa0] sm:$0xff] }
 0x766   : > { %2277 = vmatpush1.msra.mxu1 %v1819_v37  ;;  %2310 = vmatprep.mubr.f32.mxu1 %v4301_v3  ;;  %v2583_v35 = vld [vmem:[%s4542_s17 + $0x128] sm:$0xff]  ;;  %v2598_v37 = vld [vmem:[%s4542_s17 + $0x1a0] sm:$0xff] }
 0x767   : > { %2348 = vmatpush1.msra.mxu0 %v1821_v38  ;;  %2381 = vmatprep.mubr.f32.mxu0 %v4301_v3  ;;  %v2550_v38 = vld [vmem:[%s4542_s17 + $0x20] sm:$0xff] }
 0x768   : > { %3692 = vmatmul.mubr.msk.f32.vlgmr.msra.gmra.mxu1 %vm798_vm1, %v4712_v8  ;;  %3693 = vmatmul.mubr.msk.f32.vlgmr.msra.gmra.mxu0 %vm798_vm1, %v4712_v8 }
 0x769   : > { %2412 = vmatprep.subr.mxu1 %v1872_v39  ;;  %2483 = vmatprep.subr.mxu0 %v1874_v40  ;;  %v2582_v39 = vld [vmem:[%s4542_s17 + $0x120] sm:$0xff]  ;;  %v2565_v40 = vld [vmem:[%s4542_s17 + $0x98] sm:$0xff] }
 0x76a   : > { %2413 = vmatpush1.msra.mxu1 %v1871_v41  ;;  %2484 = vmatpush1.msra.mxu0 %v1873_v42  ;;  %v2597_v41 = vld [vmem:[%s4542_s17 + $0x198] sm:$0xff] }
 0x76b   : > { %2414 = vmatprep.subr.mxu1 %v1856_v43  ;;  %2485 = vmatprep.subr.mxu0 %v1858_v44  ;;  %v2549_v42 = vld [vmem:[%s4542_s17 + $0x18] sm:$0xff]  ;;  %v2564_v44 = vld [vmem:[%s4542_s17 + $0x90] sm:$0xff] }
 0x76c   : > { %2415 = vmatpush1.msra.mxu1 %v1855_v45  ;;  %2486 = vmatpush1.msra.mxu0 %v1857_v46  ;;  %v2581_v43 = vld [vmem:[%s4542_s17 + $0x118] sm:$0xff]  ;;  %v2596_v45 = vld [vmem:[%s4542_s17 + $0x190] sm:$0xff] }
 0x76d   : > { %2416 = vmatprep.subr.mxu1 %v1840_v47  ;;  %2487 = vmatprep.subr.mxu0 %v1842_v48  ;;  %v2548_v46 = vld [vmem:[%s4542_s17 + $0x10] sm:$0xff]  ;;  %v2563_v48 = vld [vmem:[%s4542_s17 + $0x88] sm:$0xff] }
 0x76e   : > { %2417 = vmatpush1.msra.mxu1 %v1839_v49  ;;  %2488 = vmatpush1.msra.mxu0 %v1841_v50  ;;  %v2580_v47 = vld [vmem:[%s4542_s17 + $0x110] sm:$0xff]  ;;  %v2595_v49 = vld [vmem:[%s4542_s17 + $0x188] sm:$0xff] }
 0x76f   : > { %2418 = vmatprep.subr.mxu1 %v1824_v51  ;;  %2489 = vmatprep.subr.mxu0 %v1826_v52  ;;  %v2547_v50 = vld [vmem:[%s4542_s17 + $0x8] sm:$0xff]  ;;  %v2562_v52 = vld [vmem:[%s4542_s17 + $0x80] sm:$0xff] }
 0x770   : > { %2419 = vmatpush1.msra.mxu1 %v1823_v53  ;;  %2452 = vmatprep.mubr.f32.mxu1 %v4301_v3  ;;  %v2579_v51 = vld [vmem:[%s4542_s17 + $0x108] sm:$0xff]  ;;  %v2594_v53 = vld [vmem:[%s4542_s17 + $0x180] sm:$0xff] }
 0x771   : > { %2490 = vmatpush1.msra.mxu0 %v1825_v54  ;;  %2523 = vmatprep.mubr.f32.mxu0 %v4301_v3  ;;  %v2575_v3 = vld [vmem:[%s4542_s17 + $0xe8] sm:$0xff]  ;;  %v2546_v54 = vld [vmem:[%s4542_s17] sm:$0xff] }
 0x772   : > { %3694 = vmatmul.mubr.msk.f32.vlgmr.msra.gmra.mxu1 %vm798_vm1, %v4712_v8  ;;  %3695 = vmatmul.mubr.msk.f32.vlgmr.msra.gmra.mxu0 %vm798_vm1, %v4712_v8 }
 0x773   : > { %3746 = vmatprep.subr.mxu1 %v2577_v55  ;;  %3781 = vmatprep.subr.mxu0 %v2609_v57  ;;  %v2578_v55 = vld [vmem:[%s4542_s17 + $0x100] sm:$0xff]  ;;  %v2641_v57 = vld [vmem:[%s4542_s17 + $0x2f8] sm:$0xff] }
 0x774   : > { %3747 = vmatpush3.msra.mxu1 %v2561_v56  ;;  %3782 = vmatpush3.msra.mxu0 %v2593_v58  ;;  %v2673_v56 = vld [vmem:[%s4542_s17 + $0x3f8] sm:$0xff]  ;;  %v1879_v58 = vlaneseq }
 0x775   : > { %3748 = vmatprep.subr.mxu1 %v2576_v59  ;;  %3783 = vmatprep.subr.mxu0 %v2608_v60 }
 0x776   : > { %3749 = vmatpush3.msra.mxu1 %v2560_v61  ;;  %3784 = vmatpush3.msra.mxu0 %v2592_v62  ;;  %v4848_v59 = vshrl.u32 %v1879_v58, 7  ;;  %v4852_v61 = vld [vmem:[%s4532_s1 + $0x8] sm:$0xff] }
 0x777   : > { %3750 = vmatprep.subr.mxu1 %v2575_v3  ;;  %3785 = vmatprep.subr.mxu0 %v2607_v63  ;;  %v2667_v58 = vld [vmem:[%s4542_s17 + $0x3c8] sm:$0xff] }
 0x778   : > { %3751 = vmatpush3.msra.mxu1 %v2559_v0  ;;  %3786 = vmatpush3.msra.mxu0 %v2591_v1  ;;  %v1897_v60 = vsub.s32 4, %v4848_v59  ;;  %v1905_v3 = vsub.s32 6, %v4848_v59  ;;  %v1881_v0 = vsub.s32 0, %v4848_v59  ;;  %v1889_v1 = vsub.s32 2, %v4848_v59 }
 0x779   : > { %3752 = vmatprep.subr.mxu1 %v2574_v2  ;;  %3787 = vmatprep.subr.mxu0 %v2606_v4  ;;  %v4868_v2 = vld [vmem:[%s4532_s1] sm:$0xff]  ;;  %v1885_v4 = vsub.s32 1, %v4848_v59 }
 0x77a   : > { %3753 = vmatpush3.msra.mxu1 %v2558_v5  ;;  %3788 = vmatpush3.msra.mxu0 %v2590_v6  ;;  %v4857_v62 = vrot.slane %v4852_v61, %v1897_v60  ;;  %v4863_v63 = vrot.slane %v4852_v61, %v1905_v3  ;;  %v1893_v5 = vsub.s32 3, %v4848_v59  ;;  %v1882_v6 = vrot.slane %v4868_v2, %v1881_v0 }
 0x77b   : > { %3754 = vmatprep.subr.mxu1 %v2573_v7  ;;  %3789 = vmatprep.subr.mxu0 %v2605_v10  ;;  %v1890_v7 = vrot.slane %v4868_v2, %v1889_v1  ;;  %v1886_v10 = vrot.slane %v4868_v2, %v1885_v4 }
 0x77c   : > { %3755 = vmatpush3.msra.mxu1 %v2557_v11  ;;  %3790 = vmatpush3.msra.mxu0 %v2589_v12  ;;  %v1894_v11 = vrot.slane %v4868_v2, %v1893_v5 }
 0x77d   : > { %3756 = vmatprep.subr.mxu1 %v2572_v13  ;;  %3791 = vmatprep.subr.mxu0 %v2604_v14 }
 0x77e   : > { %3757 = vmatpush3.msra.mxu1 %v2556_v15  ;;  %3792 = vmatpush3.msra.mxu0 %v2588_v9 }
 0x77f   : > { %3758 = vmatprep.subr.mxu1 %v2571_v16  ;;  %3793 = vmatprep.subr.mxu0 %v2603_v17 }
 0x780   : > { %3759 = vmatpush3.msra.mxu1 %v2555_v18  ;;  %3794 = vmatpush3.msra.mxu0 %v2587_v19  ;;  %v1901_v19 = vsub.s32 5, %v4848_v59 }
 0x781   : > { %3760 = vmatprep.subr.mxu1 %v2570_v20  ;;  %3795 = vmatprep.subr.mxu0 %v2602_v21  ;;  %v1909_v20 = vsub.s32 7, %v4848_v59  ;;  %v2690_v59 = vld [vmem:[%s4542_s17 + $0x480] sm:$0xff] }
 0x782   : > { %3761 = vmatpush3.msra.mxu1 %v2554_v22  ;;  %3796 = vmatpush3.msra.mxu0 %v2586_v23 }
 0x783   : > { %3762 = vmatprep.subr.mxu1 %v2569_v24  ;;  %3797 = vmatprep.subr.mxu0 %v2601_v25  ;;  %v2625_v25 = vld [vmem:[%s4542_s17 + $0x278] sm:$0xff] }
 0x784   : > { %3763 = vmatpush3.msra.mxu1 %v2553_v26  ;;  %3798 = vmatpush3.msra.mxu0 %v2585_v27  ;;  %v2657_v26 = vld [vmem:[%s4542_s17 + $0x378] sm:$0xff]  ;;  %v2640_v27 = vld [vmem:[%s4542_s17 + $0x2f0] sm:$0xff] }
 0x785   : > { %3764 = vmatprep.subr.mxu1 %v2568_v28  ;;  %3799 = vmatprep.subr.mxu0 %v2600_v29  ;;  %v2672_v28 = vld [vmem:[%s4542_s17 + $0x3f0] sm:$0xff]  ;;  %v1902_v29 = vrot.slane %v4868_v2, %v1901_v19 }
 0x786   : > { %3765 = vmatpush3.msra.mxu1 %v2552_v30  ;;  %3800 = vmatpush3.msra.mxu0 %v2584_v31  ;;  %v1910_v30 = vrot.slane %v4868_v2, %v1909_v20  ;;  %v2624_v31 = vld [vmem:[%s4542_s17 + $0x270] sm:$0xff] }
 0x787   : > { %3766 = vmatprep.subr.mxu1 %v2567_v32  ;;  %3801 = vmatprep.subr.mxu0 %v2599_v33  ;;  %v2656_v32 = vld [vmem:[%s4542_s17 + $0x370] sm:$0xff] }
 0x788   : > { %3767 = vmatpush3.msra.mxu1 %v2551_v34  ;;  %3802 = vmatpush3.msra.mxu0 %v2583_v35  ;;  %v2639_v35 = vld [vmem:[%s4542_s17 + $0x2e8] sm:$0xff] }
 0x789   : > { %3768 = vmatprep.subr.mxu1 %v2566_v36  ;;  %3803 = vmatprep.subr.mxu0 %v2598_v37  ;;  %v2671_v36 = vld [vmem:[%s4542_s17 + $0x3e8] sm:$0xff] }
 0x78a   : > { %3769 = vmatpush3.msra.mxu1 %v2550_v38  ;;  %3804 = vmatpush3.msra.mxu0 %v2582_v39  ;;  %v2623_v37 = vld [vmem:[%s4542_s17 + $0x268] sm:$0xff] }
 0x78b   : > { %3770 = vmatprep.subr.mxu1 %v2565_v40  ;;  %3805 = vmatprep.subr.mxu0 %v2597_v41  ;;  %v2655_v38 = vld [vmem:[%s4542_s17 + $0x368] sm:$0xff]  ;;  %v2638_v41 = vld [vmem:[%s4542_s17 + $0x2e0] sm:$0xff] }
 0x78c   : > { %3771 = vmatpush3.msra.mxu1 %v2549_v42  ;;  %3806 = vmatpush3.msra.mxu0 %v2581_v43  ;;  %v2670_v42 = vld [vmem:[%s4542_s17 + $0x3e0] sm:$0xff] }
 0x78d   : > { %3772 = vmatprep.subr.mxu1 %v2564_v44  ;;  %3807 = vmatprep.subr.mxu0 %v2596_v45  ;;  %v2622_v45 = vld [vmem:[%s4542_s17 + $0x260] sm:$0xff] }
 0x78e   : > { %3773 = vmatpush3.msra.mxu1 %v2548_v46  ;;  %3808 = vmatpush3.msra.mxu0 %v2580_v47  ;;  %v2654_v46 = vld [vmem:[%s4542_s17 + $0x360] sm:$0xff] }
 0x78f   : > { %3774 = vmatprep.subr.mxu1 %v2563_v48  ;;  %3809 = vmatprep.subr.mxu0 %v2595_v49  ;;  %v2637_v49 = vld [vmem:[%s4542_s17 + $0x2d8] sm:$0xff] }
 0x790   : > { %3775 = vmatpush3.msra.mxu1 %v2547_v50  ;;  %3810 = vmatpush3.msra.mxu0 %v2579_v51  ;;  %v2669_v50 = vld [vmem:[%s4542_s17 + $0x3d8] sm:$0xff] }
 0x791   : > { %3776 = vmatprep.subr.mxu1 %v2562_v52  ;;  %3811 = vmatprep.subr.mxu0 %v2594_v53  ;;  %v2621_v51 = vld [vmem:[%s4542_s17 + $0x258] sm:$0xff]  ;;  %v2636_v53 = vld [vmem:[%s4542_s17 + $0x2d0] sm:$0xff] }
 0x792   : > { %3777 = vmatpush3.msra.mxu1 %v2546_v54  ;;  %3812 = vmatpush3.msra.mxu0 %v2578_v55  ;;  %v2653_v52 = vld [vmem:[%s4542_s17 + $0x358] sm:$0xff]  ;;  %v2668_v54 = vld [vmem:[%s4542_s17 + $0x3d0] sm:$0xff] }
 0x793   : > { %3816 = vmatprep.subr.mxu1 %v2641_v57  ;;  %3851 = vmatprep.subr.mxu0 %v2673_v56  ;;  %v2620_v55 = vld [vmem:[%s4542_s17 + $0x250] sm:$0xff]  ;;  %v2635_v56 = vld [vmem:[%s4542_s17 + $0x2c8] sm:$0xff] }
 0x794   : > { %v2652_v57 = vld [vmem:[%s4542_s17 + $0x350] sm:$0xff] }
 0x815   : > { %v2028_v12 = vpop.f32.mrf.mxu1  ;;  %v2099_v13 = vpop.f32.mrf.mxu0 }
 0x816   : > { %v2029_v14 = vadd.f32 %v2028_v12, %v1882_v6  ;;  %v2100_v15 = vadd.f32 %v2099_v13, %v1890_v7  ;;  %v2619_v6 = vld [vmem:[%s4542_s17 + $0x248] sm:$0xff]  ;;  %v2618_v12 = vld [vmem:[%s4542_s17 + $0x240] sm:$0xff] }
 0x817   : > { %v2030_v9 = vpop.f32.mrf.mxu1  ;;  %v2101_v16 = vpop.f32.mrf.mxu0  ;;  %v2651_v7 = vld [vmem:[%s4542_s17 + $0x348] sm:$0xff]  ;;  %v2650_v13 = vld [vmem:[%s4542_s17 + $0x340] sm:$0xff] }
 0x818   : > { %v2031_v17 = vadd.f32 %v2030_v9, %v1886_v10  ;;  %v2102_v18 = vadd.f32 %v2101_v16, %v1894_v11  ;;  %v2530_v23 = vmax.f32 %v2029_v14, 0.0  ;;  %v2532_v24 = vmax.f32 %v2100_v15, 0.0  ;;  %v2634_v10 = vld [vmem:[%s4542_s17 + $0x2c0] sm:$0xff]  ;;  %v2633_v14 = vld [vmem:[%s4542_s17 + $0x2b8] sm:$0xff] }
 0x819   : > { %v2666_v11 = vld [vmem:[%s4542_s17 + $0x3c0] sm:$0xff]  ;;  %v2665_v15 = vld [vmem:[%s4542_s17 + $0x3b8] sm:$0xff] }
 0x81a   : > { %v2531_v21 = vmax.f32 %v2031_v17, 0.0  ;;  %v2533_v22 = vmax.f32 %v2102_v18, 0.0  ;;  %v2617_v9 = vld [vmem:[%s4542_s17 + $0x238] sm:$0xff]  ;;  %v2632_v17 = vld [vmem:[%s4542_s17 + $0x2b0] sm:$0xff] }
 0x81b   : > { %v2649_v16 = vld [vmem:[%s4542_s17 + $0x338] sm:$0xff]  ;;  %v2664_v18 = vld [vmem:[%s4542_s17 + $0x3b0] sm:$0xff] }
 0x81c   : > { %2873 = vmatprep.mubr.f32.mxu1 %v2531_v21  ;;  %2943 = vmatprep.mubr.f32.mxu0 %v2533_v22  ;;  %v2616_v21 = vld [vmem:[%s4542_s17 + $0x230] sm:$0xff] }
 0x81d   : > { %2874 = vmatmul.mubr.f32.vlgmr.msra.gmra.mxu1 %v2530_v23  ;;  %2944 = vmatmul.mubr.f32.vlgmr.msra.gmra.mxu0 %v2532_v24  ;;  %v2648_v22 = vld [vmem:[%s4542_s17 + $0x330] sm:$0xff]  ;;  %v2631_v23 = vld [vmem:[%s4542_s17 + $0x2a8] sm:$0xff] }
 0x81e   : > { %v4898_v33 = vpop.f32.mrf.mxu1  ;;  %v4900_v34 = vpop.f32.mrf.mxu0  ;;  %3817 = vmatpush3.msra.mxu1 %v2625_v25  ;;  %3852 = vmatpush3.msra.mxu0 %v2657_v26  ;;  %v2663_v24 = vld [vmem:[%s4542_s17 + $0x3a8] sm:$0xff] }
 0x81f   : > { %3818 = vmatprep.subr.mxu1 %v2640_v27  ;;  %3853 = vmatprep.subr.mxu0 %v2672_v28  ;;  %v2615_v25 = vld [vmem:[%s4542_s17 + $0x228] sm:$0xff]  ;;  %v2630_v27 = vld [vmem:[%s4542_s17 + $0x2a0] sm:$0xff] }
 0x820   : > { %v2172_v39 = vpop.f32.mrf.mxu1  ;;  %v2243_v40 = vpop.f32.mrf.mxu0  ;;  %3819 = vmatpush3.msra.mxu1 %v2624_v31  ;;  %3854 = vmatpush3.msra.mxu0 %v2656_v32  ;;  %v2647_v26 = vld [vmem:[%s4542_s17 + $0x328] sm:$0xff]  ;;  %v2662_v28 = vld [vmem:[%s4542_s17 + $0x3a0] sm:$0xff]  ;;  %v2629_v32 = vld [vmem:[%s4542_s17 + $0x298] sm:$0xff] }
 0x821   : > { %v2173_v43 = vadd.f32 %v2172_v39, %v1902_v29  ;;  %v2244_v44 = vadd.f32 %v2243_v40, %v1910_v30  ;;  %3820 = vmatprep.subr.mxu1 %v2639_v35  ;;  %3855 = vmatprep.subr.mxu0 %v2671_v36  ;;  %v2614_v29 = vld [vmem:[%s4542_s17 + $0x220] sm:$0xff]  ;;  %v2661_v35 = vld [vmem:[%s4542_s17 + $0x398] sm:$0xff]  ;;  %v1898_v36 = vrot.slane %v4868_v2, %v1897_v60 }
 0x822   : > { %3821 = vmatpush3.msra.mxu1 %v2623_v37  ;;  %3856 = vmatpush3.msra.mxu0 %v2655_v38  ;;  %v2646_v30 = vld [vmem:[%s4542_s17 + $0x320] sm:$0xff]  ;;  %v1906_v37 = vrot.slane %v4868_v2, %v1905_v3  ;;  %v2613_v39 = vld [vmem:[%s4542_s17 + $0x218] sm:$0xff]  ;;  %v1918_v60 = vrot.slane %v4852_v61, %v1885_v4  ;;  %v2612_v3 = vld [vmem:[%s4542_s17 + $0x210] sm:$0xff] }
 0x823   : > { %v2535_v47 = vmax.f32 %v2173_v43, 0.0  ;;  %v2537_v48 = vmax.f32 %v2244_v44, 0.0  ;;  %3822 = vmatprep.subr.mxu1 %v2638_v41  ;;  %3857 = vmatprep.subr.mxu0 %v2670_v42  ;;  %v2645_v40 = vld [vmem:[%s4542_s17 + $0x318] sm:$0xff]  ;;  %v2628_v41 = vld [vmem:[%s4542_s17 + $0x290] sm:$0xff]  ;;  %v1926_v44 = vrot.slane %v4852_v61, %v1893_v5  ;;  %v2171_v4 = vadd.f32 %v4898_v33, %v1898_v36  ;;  %v2626_v5 = vld [vmem:[%s4542_s17 + $0x280] sm:$0xff] }
 0x824   : > { %3823 = vmatpush3.msra.mxu1 %v2622_v45  ;;  %3858 = vmatpush3.msra.mxu0 %v2654_v46  ;;  %v2660_v42 = vld [vmem:[%s4542_s17 + $0x390] sm:$0xff]  ;;  %v2627_v45 = vld [vmem:[%s4542_s17 + $0x288] sm:$0xff] }
 0x825   : > { %3013 = vmatprep.mubr.f32.mxu1 %v2535_v47  ;;  %3083 = vmatprep.mubr.f32.mxu0 %v2537_v48  ;;  %v2644_v2 = vld [vmem:[%s4542_s17 + $0x310] sm:$0xff]  ;;  %v2659_v46 = vld [vmem:[%s4542_s17 + $0x388] sm:$0xff]  ;;  %v2242_v47 = vadd.f32 %v4900_v34, %v1906_v37  ;;  %v2534_v34 = vmax.f32 %v2171_v4, 0.0 }
 0x826   : > { %3824 = vmatprep.subr.mxu1 %v2637_v49  ;;  %3859 = vmatprep.subr.mxu0 %v2669_v50  ;;  %v2611_v49 = vld [vmem:[%s4542_s17 + $0x208] sm:$0xff]  ;;  %v2680_v4 = vld [vmem:[%s4542_s17 + $0x430] sm:$0xff] }
 0x827   : > { %3825 = vmatpush3.msra.mxu1 %v2621_v51  ;;  %3860 = vmatpush3.msra.mxu0 %v2653_v52  ;;  %v2643_v50 = vld [vmem:[%s4542_s17 + $0x308] sm:$0xff]  ;;  %v2658_v51 = vld [vmem:[%s4542_s17 + $0x380] sm:$0xff] }
 0x828   : > { %3826 = vmatprep.subr.mxu1 %v2636_v53  ;;  %3861 = vmatprep.subr.mxu0 %v2668_v54  ;;  %v4942_v31 = vpop.f32.mrf.mxu1  ;;  %v4952_v38 = vpop.f32.mrf.mxu0  ;;  %v2610_v53 = vld [vmem:[%s4542_s17 + $0x200] sm:$0xff]  ;;  %v2731_v36 = vld [vmem:[%s4542_s17 + $0x5c8] sm:$0xff] }
 0x829   : > { %3827 = vmatpush3.msra.mxu1 %v2620_v55  ;;  %3862 = vmatpush3.msra.mxu0 %v2652_v57  ;;  %v2642_v54 = vld [vmem:[%s4542_s17 + $0x300] sm:$0xff]  ;;  %v2536_v55 = vmax.f32 %v2242_v47, 0.0  ;;  %v2705_v57 = vld [vmem:[%s4542_s17 + $0x4f8] sm:$0xff]  ;;  %v2683_v37 = vld [vmem:[%s4542_s17 + $0x448] sm:$0xff] }
 0x82a   : > { %3828 = vmatprep.subr.mxu1 %v2635_v56  ;;  %3863 = vmatprep.subr.mxu0 %v2667_v58  ;;  %v2314_v43 = vpop.f32.mrf.mxu1  ;;  %v2385_v48 = vpop.f32.mrf.mxu0  ;;  %v2737_v56 = vld [vmem:[%s4542_s17 + $0x5f8] sm:$0xff]  ;;  %v2712_v47 = vld [vmem:[%s4542_s17 + $0x530] sm:$0xff] }
 0x82b   : > { %3829 = vmatpush3.msra.mxu1 %v2619_v6  ;;  %3864 = vmatpush3.msra.mxu0 %v2651_v7  ;;  %v2315_v52 = vadd.f32 %v2314_v43, %v1918_v60  ;;  %v2386_v33 = vadd.f32 %v2385_v48, %v1926_v44  ;;  %v2689_v58 = vld [vmem:[%s4542_s17 + $0x478] sm:$0xff]  ;;  %v2714_v60 = vld [vmem:[%s4542_s17 + $0x540] sm:$0xff]  ;;  %v2695_v48 = vld [vmem:[%s4542_s17 + $0x4a8] sm:$0xff] }
 0x82c   : > { %3830 = vmatprep.subr.mxu1 %v2634_v10  ;;  %3865 = vmatprep.subr.mxu0 %v2666_v11  ;;  %v2721_v7 = vld [vmem:[%s4542_s17 + $0x578] sm:$0xff]  ;;  %v2704_v11 = vld [vmem:[%s4542_s17 + $0x4f0] sm:$0xff] }
 0x82d   : > { %3831 = vmatpush3.msra.mxu1 %v2618_v12  ;;  %3866 = vmatpush3.msra.mxu0 %v2650_v13  ;;  %v2539_v6 = vmax.f32 %v2315_v52, 0.0  ;;  %v2541_v10 = vmax.f32 %v2386_v33, 0.0  ;;  %v2736_v12 = vld [vmem:[%s4542_s17 + $0x5f0] sm:$0xff]  ;;  %v2681_v43 = vld [vmem:[%s4542_s17 + $0x438] sm:$0xff]  ;;  %v2726_v52 = vld [vmem:[%s4542_s17 + $0x5a0] sm:$0xff] }
 0x82e   : > { %3832 = vmatprep.subr.mxu1 %v2633_v14  ;;  %3867 = vmatprep.subr.mxu0 %v2665_v15  ;;  %v2688_v13 = vld [vmem:[%s4542_s17 + $0x470] sm:$0xff]  ;;  %v2703_v15 = vld [vmem:[%s4542_s17 + $0x4e8] sm:$0xff]  ;;  %v2713_v44 = vld [vmem:[%s4542_s17 + $0x538] sm:$0xff] }
 0x82f   : > { %3833 = vmatpush3.msra.mxu1 %v2617_v9  ;;  %3868 = vmatpush3.msra.mxu0 %v2649_v16  ;;  %v2720_v14 = vld [vmem:[%s4542_s17 + $0x570] sm:$0xff]  ;;  %v2735_v9 = vld [vmem:[%s4542_s17 + $0x5e8] sm:$0xff] }
 0x830   : > { %3834 = vmatprep.subr.mxu1 %v2632_v17  ;;  %3869 = vmatprep.subr.mxu0 %v2664_v18  ;;  %v2687_v16 = vld [vmem:[%s4542_s17 + $0x468] sm:$0xff]  ;;  %v2702_v18 = vld [vmem:[%s4542_s17 + $0x4e0] sm:$0xff] }
 0x831   : > { %3835 = vmatpush3.msra.mxu1 %v2616_v21  ;;  %3870 = vmatpush3.msra.mxu0 %v2648_v22  ;;  %v2719_v17 = vld [vmem:[%s4542_s17 + $0x568] sm:$0xff]  ;;  %v2734_v21 = vld [vmem:[%s4542_s17 + $0x5e0] sm:$0xff] }
 0x832   : > { %3836 = vmatprep.subr.mxu1 %v2631_v23  ;;  %3871 = vmatprep.subr.mxu0 %v2663_v24  ;;  %v2686_v22 = vld [vmem:[%s4542_s17 + $0x460] sm:$0xff]  ;;  %v2701_v24 = vld [vmem:[%s4542_s17 + $0x4d8] sm:$0xff]  ;;  %v5024_v33 = vpop.f32.mrf.mxu1 }
 0x833   : > { %3837 = vmatpush3.msra.mxu1 %v2615_v25  ;;  %3872 = vmatpush3.msra.mxu0 %v2647_v26  ;;  %v2718_v23 = vld [vmem:[%s4542_s17 + $0x560] sm:$0xff]  ;;  %v2733_v25 = vld [vmem:[%s4542_s17 + $0x5d8] sm:$0xff] }
 0x834   : > { %3838 = vmatprep.subr.mxu1 %v2630_v27  ;;  %3873 = vmatprep.subr.mxu0 %v2662_v28  ;;  %v2685_v26 = vld [vmem:[%s4542_s17 + $0x458] sm:$0xff]  ;;  %v2700_v28 = vld [vmem:[%s4542_s17 + $0x4d0] sm:$0xff] }
 0x835   : > { %3839 = vmatpush3.msra.mxu1 %v2614_v29  ;;  %3874 = vmatpush3.msra.mxu0 %v2646_v30  ;;  %v2717_v27 = vld [vmem:[%s4542_s17 + $0x558] sm:$0xff]  ;;  %v2732_v29 = vld [vmem:[%s4542_s17 + $0x5d0] sm:$0xff] }
 0x836   : > { %3840 = vmatprep.subr.mxu1 %v2629_v32  ;;  %3875 = vmatprep.subr.mxu0 %v2661_v35  ;;  %v2684_v30 = vld [vmem:[%s4542_s17 + $0x450] sm:$0xff]  ;;  %v2699_v35 = vld [vmem:[%s4542_s17 + $0x4c8] sm:$0xff] }
 0x837   : > { %3841 = vmatpush3.msra.mxu1 %v2613_v39  ;;  %3876 = vmatpush3.msra.mxu0 %v2645_v40  ;;  %v2716_v32 = vld [vmem:[%s4542_s17 + $0x550] sm:$0xff]  ;;  %v2715_v39 = vld [vmem:[%s4542_s17 + $0x548] sm:$0xff]  ;;  %v2698_v40 = vld [vmem:[%s4542_s17 + $0x4c0] sm:$0xff] }
 0x838   : > { %3842 = vmatprep.subr.mxu1 %v2628_v41  ;;  %3877 = vmatprep.subr.mxu0 %v2660_v42  ;;  %v2730_v41 = vld [vmem:[%s4542_s17 + $0x5c0] sm:$0xff] }
 0x839   : > { %3843 = vmatpush3.msra.mxu1 %v2612_v3  ;;  %3878 = vmatpush3.msra.mxu0 %v2644_v2  ;;  %v2682_v42 = vld [vmem:[%s4542_s17 + $0x440] sm:$0xff]  ;;  %v2697_v3 = vld [vmem:[%s4542_s17 + $0x4b8] sm:$0xff] }
 0x83a   : > { %3844 = vmatprep.subr.mxu1 %v2627_v45  ;;  %3879 = vmatprep.subr.mxu0 %v2659_v46  ;;  %v2729_v2 = vld [vmem:[%s4542_s17 + $0x5b8] sm:$0xff]  ;;  %v2696_v45 = vld [vmem:[%s4542_s17 + $0x4b0] sm:$0xff] }
 0x83b   : > { %3845 = vmatpush3.msra.mxu1 %v2611_v49  ;;  %3880 = vmatpush3.msra.mxu0 %v2643_v50  ;;  %v2728_v46 = vld [vmem:[%s4542_s17 + $0x5b0] sm:$0xff]  ;;  %v2727_v49 = vld [vmem:[%s4542_s17 + $0x5a8] sm:$0xff] }
 0x83c   : > { %3846 = vmatprep.subr.mxu1 %v2626_v5  ;;  %3881 = vmatprep.subr.mxu0 %v2658_v51  ;;  %v2679_v50 = vld [vmem:[%s4542_s17 + $0x428] sm:$0xff]  ;;  %v2694_v51 = vld [vmem:[%s4542_s17 + $0x4a0] sm:$0xff] }
 0x83d   : > { %3847 = vmatpush3.msra.mxu1 %v2610_v53  ;;  %3882 = vmatpush3.msra.mxu0 %v2642_v54  ;;  %v2711_v5 = vld [vmem:[%s4542_s17 + $0x528] sm:$0xff]  ;;  %v2678_v53 = vld [vmem:[%s4542_s17 + $0x420] sm:$0xff] }
 0x83e   : > { %3014 = vmatmul.mubr.f32.vlgmr.msra.gmra.mxu1 %v2534_v34  ;;  %3084 = vmatmul.mubr.f32.vlgmr.msra.gmra.mxu0 %v2536_v55  ;;  %v2710_v54 = vld [vmem:[%s4542_s17 + $0x520] sm:$0xff]  ;;  %v2693_v34 = vld [vmem:[%s4542_s17 + $0x498] sm:$0xff] }
 0x83f   : > { %3886 = vmatprep.subr.mxu1 %v2705_v57  ;;  %3921 = vmatprep.subr.mxu0 %v2737_v56  ;;  %v2725_v55 = vld [vmem:[%s4542_s17 + $0x598] sm:$0xff]  ;;  %v1914_v57 = vrot.slane %v4852_v61, %v1881_v0  ;;  %v1922_v56 = vrot.slane %v4852_v61, %v1889_v1  ;;  %v1934_v0 = vrot.slane %v4852_v61, %v1901_v19  ;;  %v2676_v1 = vld [vmem:[%s4542_s17 + $0x410] sm:$0xff] }
 0x840   : > { %3887 = vmatpush3.msra.mxu1 %v2689_v58  ;;  %3153 = vmatprep.mubr.f32.mxu1 %v2539_v6  ;;  %v5034_v58 = vpop.f32.mrf.mxu0  ;;  %v2677_v6 = vld [vmem:[%s4542_s17 + $0x418] sm:$0xff] }
 0x841   : > { %3922 = vmatpush3.msra.mxu0 %v2721_v7  ;;  %3223 = vmatprep.mubr.f32.mxu0 %v2541_v10  ;;  %v2709_v7 = vld [vmem:[%s4542_s17 + $0x518] sm:$0xff]  ;;  %v2692_v10 = vld [vmem:[%s4542_s17 + $0x490] sm:$0xff]  ;;  %v2313_v19 = vadd.f32 %v4942_v31, %v1914_v57  ;;  %v2778_v57 = vld [vmem:[%s4542_s17 + $0x740] sm:$0xff] }
 0x842   : > { %3888 = vmatprep.subr.mxu1 %v2704_v11  ;;  %3923 = vmatprep.subr.mxu0 %v2736_v12  ;;  %v2724_v11 = vld [vmem:[%s4542_s17 + $0x590] sm:$0xff] }
 0x843   : > { %3889 = vmatpush3.msra.mxu1 %v2688_v13  ;;  %3924 = vmatpush3.msra.mxu0 %v2720_v14  ;;  %v2708_v12 = vld [vmem:[%s4542_s17 + $0x510] sm:$0xff]  ;;  %v2456_v13 = vpop.f32.mrf.mxu1  ;;  %v1942_v14 = vrot.slane %v4852_v61, %v1909_v20  ;;  %v2722_v61 = vld [vmem:[%s4542_s17 + $0x580] sm:$0xff] }
 0x844   : > { %3890 = vmatprep.subr.mxu1 %v2703_v15  ;;  %3925 = vmatprep.subr.mxu0 %v2735_v9  ;;  %v2691_v15 = vld [vmem:[%s4542_s17 + $0x488] sm:$0xff]  ;;  %v2457_v20 = vadd.f32 %v2456_v13, %v1934_v0  ;;  %v2792_v0 = vld [vmem:[%s4542_s17 + $0x7b0] sm:$0xff] }
 0x845   : > { %3891 = vmatpush3.msra.mxu1 %v2687_v16  ;;  %3926 = vmatpush3.msra.mxu0 %v2719_v17  ;;  %v2723_v9 = vld [vmem:[%s4542_s17 + $0x588] sm:$0xff]  ;;  %v2384_v16 = vadd.f32 %v4952_v38, %v1922_v56  ;;  %v2527_v17 = vpop.f32.mrf.mxu0  ;;  %v2538_v38 = vmax.f32 %v2313_v19, 0.0  ;;  %v2761_v56 = vld [vmem:[%s4542_s17 + $0x6b8] sm:$0xff]  ;;  %v2758_v19 = vld [vmem:[%s4542_s17 + $0x6a0] sm:$0xff] }
 0x846   : > { %3892 = vmatprep.subr.mxu1 %v2702_v18  ;;  %3927 = vmatprep.subr.mxu0 %v2734_v21  ;;  %v2675_v18 = vld [vmem:[%s4542_s17 + $0x408] sm:$0xff]  ;;  %v2528_v31 = vadd.f32 %v2527_v17, %v1942_v14  ;;  %v2742_v17 = vld [vmem:[%s4542_s17 + $0x620] sm:$0xff] }
 0x847   : > { %3893 = vmatpush3.msra.mxu1 %v2686_v22  ;;  %3928 = vmatpush3.msra.mxu0 %v2718_v23  ;;  %v2707_v21 = vld [vmem:[%s4542_s17 + $0x508] sm:$0xff]  ;;  %v2674_v22 = vld [vmem:[%s4542_s17 + $0x400] sm:$0xff] }
 0x848   : > { %3894 = vmatprep.subr.mxu1 %v2701_v24  ;;  %3929 = vmatprep.subr.mxu0 %v2733_v25  ;;  %v2706_v23 = vld [vmem:[%s4542_s17 + $0x500] sm:$0xff]  ;;  %v2540_v24 = vmax.f32 %v2384_v16, 0.0  ;;  %v2769_v25 = vld [vmem:[%s4542_s17 + $0x6f8] sm:$0xff]  ;;  %v2759_v13 = vld [vmem:[%s4542_s17 + $0x6a8] sm:$0xff] }
 0x849   : > { %3895 = vmatpush3.msra.mxu1 %v2685_v26  ;;  %3930 = vmatpush3.msra.mxu0 %v2717_v27  ;;  %v2801_v26 = vld [vmem:[%s4542_s17 + $0x7f8] sm:$0xff]  ;;  %v2791_v14 = vld [vmem:[%s4542_s17 + $0x7a8] sm:$0xff]  ;;  %v2790_v16 = vld [vmem:[%s4542_s17 + $0x7a0] sm:$0xff] }
 0x84a   : > { %3896 = vmatprep.subr.mxu1 %v2700_v28  ;;  %3931 = vmatprep.subr.mxu0 %v2732_v29  ;;  %v2753_v27 = vld [vmem:[%s4542_s17 + $0x678] sm:$0xff]  ;;  %v2543_v28 = vmax.f32 %v2457_v20, 0.0 }
 0x84b   : > { %3897 = vmatpush3.msra.mxu1 %v2684_v30  ;;  %3932 = vmatpush3.msra.mxu0 %v2716_v32  ;;  %v2785_v29 = vld [vmem:[%s4542_s17 + $0x778] sm:$0xff]  ;;  %v2545_v30 = vmax.f32 %v2528_v31, 0.0  ;;  %v2768_v32 = vld [vmem:[%s4542_s17 + $0x6f0] sm:$0xff] }
 0x84c   : > { %3898 = vmatprep.subr.mxu1 %v2699_v35  ;;  %3933 = vmatprep.subr.mxu0 %v2731_v36  ;;  %v2800_v35 = vld [vmem:[%s4542_s17 + $0x7f0] sm:$0xff]  ;;  %v2773_v20 = vld [vmem:[%s4542_s17 + $0x718] sm:$0xff] }
 0x84d   : > { %3899 = vmatpush3.msra.mxu1 %v2683_v37  ;;  %3934 = vmatpush3.msra.mxu0 %v2715_v39  ;;  %v2752_v36 = vld [vmem:[%s4542_s17 + $0x670] sm:$0xff]  ;;  %v2767_v39 = vld [vmem:[%s4542_s17 + $0x6e8] sm:$0xff] }
 0x84e   : > { %3900 = vmatprep.subr.mxu1 %v2698_v40  ;;  %3935 = vmatprep.subr.mxu0 %v2730_v41  ;;  %v2784_v37 = vld [vmem:[%s4542_s17 + $0x770] sm:$0xff]  ;;  %v2799_v40 = vld [vmem:[%s4542_s17 + $0x7e8] sm:$0xff] }
 0x84f   : > { %3901 = vmatpush3.msra.mxu1 %v2682_v42  ;;  %3936 = vmatpush3.msra.mxu0 %v2714_v60  ;;  %v2751_v41 = vld [vmem:[%s4542_s17 + $0x668] sm:$0xff]  ;;  %v2766_v60 = vld [vmem:[%s4542_s17 + $0x6e0] sm:$0xff]  ;;  %v2740_v31 = vld [vmem:[%s4542_s17 + $0x610] sm:$0xff] }
 0x850   : > { %3902 = vmatprep.subr.mxu1 %v2697_v3  ;;  %3937 = vmatprep.subr.mxu0 %v2729_v2  ;;  %v2783_v42 = vld [vmem:[%s4542_s17 + $0x768] sm:$0xff]  ;;  %v2798_v3 = vld [vmem:[%s4542_s17 + $0x7e0] sm:$0xff] }
 0x851   : > { %3903 = vmatpush3.msra.mxu1 %v2681_v43  ;;  %3938 = vmatpush3.msra.mxu0 %v2713_v44  ;;  %v2750_v2 = vld [vmem:[%s4542_s17 + $0x660] sm:$0xff]  ;;  %v2765_v44 = vld [vmem:[%s4542_s17 + $0x6d8] sm:$0xff] }
 0x852   : > { %3904 = vmatprep.subr.mxu1 %v2696_v45  ;;  %3939 = vmatprep.subr.mxu0 %v2728_v46  ;;  %v2782_v43 = vld [vmem:[%s4542_s17 + $0x760] sm:$0xff]  ;;  %v2797_v45 = vld [vmem:[%s4542_s17 + $0x7d8] sm:$0xff] }
 0x853   : > { %3905 = vmatpush3.msra.mxu1 %v2680_v4  ;;  %3940 = vmatpush3.msra.mxu0 %v2712_v47  ;;  %v2749_v46 = vld [vmem:[%s4542_s17 + $0x658] sm:$0xff]  ;;  %v2764_v47 = vld [vmem:[%s4542_s17 + $0x6d0] sm:$0xff] }
 0x854   : > { %3906 = vmatprep.subr.mxu1 %v2695_v48  ;;  %3941 = vmatprep.subr.mxu0 %v2727_v49  ;;  %v2781_v4 = vld [vmem:[%s4542_s17 + $0x758] sm:$0xff]  ;;  %v2796_v48 = vld [vmem:[%s4542_s17 + $0x7d0] sm:$0xff] }
 0x855   : > { %3907 = vmatpush3.msra.mxu1 %v2679_v50  ;;  %3942 = vmatpush3.msra.mxu0 %v2711_v5  ;;  %v2748_v49 = vld [vmem:[%s4542_s17 + $0x650] sm:$0xff]  ;;  %v2763_v5 = vld [vmem:[%s4542_s17 + $0x6c8] sm:$0xff] }
 0x856   : > { %3908 = vmatprep.subr.mxu1 %v2694_v51  ;;  %3943 = vmatprep.subr.mxu0 %v2726_v52  ;;  %v2780_v50 = vld [vmem:[%s4542_s17 + $0x750] sm:$0xff]  ;;  %v2795_v51 = vld [vmem:[%s4542_s17 + $0x7c8] sm:$0xff] }
 0x857   : > { %3909 = vmatpush3.msra.mxu1 %v2678_v53  ;;  %3944 = vmatpush3.msra.mxu0 %v2710_v54  ;;  %v2747_v52 = vld [vmem:[%s4542_s17 + $0x648] sm:$0xff]  ;;  %v2762_v54 = vld [vmem:[%s4542_s17 + $0x6c0] sm:$0xff] }
 0x858   : > { %3910 = vmatprep.subr.mxu1 %v2693_v34  ;;  %3945 = vmatprep.subr.mxu0 %v2725_v55  ;;  %v2779_v53 = vld [vmem:[%s4542_s17 + $0x748] sm:$0xff]  ;;  %v2794_v34 = vld [vmem:[%s4542_s17 + $0x7c0] sm:$0xff] }
 0x859   : > { %3911 = vmatpush3.msra.mxu1 %v2677_v6  ;;  %3946 = vmatpush3.msra.mxu0 %v2709_v7  ;;  %v2746_v55 = vld [vmem:[%s4542_s17 + $0x640] sm:$0xff]  ;;  %v2793_v6 = vld [vmem:[%s4542_s17 + $0x7b8] sm:$0xff] }
 0x85a   : > { %3912 = vmatprep.subr.mxu1 %v2692_v10  ;;  %3947 = vmatprep.subr.mxu0 %v2724_v11  ;;  %v2745_v7 = vld [vmem:[%s4542_s17 + $0x638] sm:$0xff]  ;;  %v2760_v11 = vld [vmem:[%s4542_s17 + $0x6b0] sm:$0xff] }
 0x85b   : > { %3913 = vmatpush3.msra.mxu1 %v2676_v1  ;;  %3948 = vmatpush3.msra.mxu0 %v2708_v12  ;;  %v2777_v10 = vld [vmem:[%s4542_s17 + $0x738] sm:$0xff]  ;;  %v2744_v1 = vld [vmem:[%s4542_s17 + $0x630] sm:$0xff] }
 0x85c   : > { %3914 = vmatprep.subr.mxu1 %v2691_v15  ;;  %3949 = vmatprep.subr.mxu0 %v2723_v9  ;;  %v2776_v12 = vld [vmem:[%s4542_s17 + $0x730] sm:$0xff]  ;;  %v2743_v15 = vld [vmem:[%s4542_s17 + $0x628] sm:$0xff] }
 0x85d   : > { %3915 = vmatpush3.msra.mxu1 %v2675_v18  ;;  %3950 = vmatpush3.msra.mxu0 %v2707_v21  ;;  %v2775_v9 = vld [vmem:[%s4542_s17 + $0x728] sm:$0xff]  ;;  %v2774_v18 = vld [vmem:[%s4542_s17 + $0x720] sm:$0xff]  ;;  %v2757_v21 = vld [vmem:[%s4542_s17 + $0x698] sm:$0xff] }
 0x85e   : > { %3916 = vmatprep.subr.mxu1 %v2690_v59  ;;  %3951 = vmatprep.subr.mxu0 %v2722_v61  ;;  %v2789_v59 = vld [vmem:[%s4542_s17 + $0x798] sm:$0xff] }
 0x85f   : > { %3917 = vmatpush3.msra.mxu1 %v2674_v22  ;;  %3952 = vmatpush3.msra.mxu0 %v2706_v23  ;;  %v2741_v61 = vld [vmem:[%s4542_s17 + $0x618] sm:$0xff]  ;;  %v2756_v22 = vld [vmem:[%s4542_s17 + $0x690] sm:$0xff] }
 0x860   : > { %3154 = vmatmul.mubr.f32.vlgmr.msra.gmra.mxu1 %v2538_v38  ;;  %3224 = vmatmul.mubr.f32.vlgmr.msra.gmra.mxu0 %v2540_v24  ;;  %v2788_v23 = vld [vmem:[%s4542_s17 + $0x790] sm:$0xff]  ;;  %v2755_v24 = vld [vmem:[%s4542_s17 + $0x688] sm:$0xff] }
 0x861   : > { %3956 = vmatprep.subr.mxu1 %v2769_v25  ;;  %3991 = vmatprep.subr.mxu0 %v2801_v26  ;;  %v2772_v38 = vld [vmem:[%s4542_s17 + $0x710] sm:$0xff]  ;;  %v2787_v25 = vld [vmem:[%s4542_s17 + $0x788] sm:$0xff]  ;;  %v2455_v26 = vadd.f32 %v5024_v33, %v4857_v62 }
 0x862   : > { %3957 = vmatpush3.msra.mxu1 %v2753_v27  ;;  %3293 = vmatprep.mubr.f32.mxu1 %v2543_v28  ;;  %v2526_v27 = vadd.f32 %v5034_v58, %v4863_v63  ;;  %v2739_v28 = vld [vmem:[%s4542_s17 + $0x608] sm:$0xff] }
 0x863   : > { %3992 = vmatpush3.msra.mxu0 %v2785_v29  ;;  %3363 = vmatprep.mubr.f32.mxu0 %v2545_v30  ;;  %v2771_v29 = vld [vmem:[%s4542_s17 + $0x708] sm:$0xff]  ;;  %v2754_v30 = vld [vmem:[%s4542_s17 + $0x680] sm:$0xff] }
 0x864   : > { %3958 = vmatprep.subr.mxu1 %v2768_v32  ;;  %3993 = vmatprep.subr.mxu0 %v2800_v35  ;;  %v2786_v32 = vld [vmem:[%s4542_s17 + $0x780] sm:$0xff]  ;;  %v2544_v62 = vmax.f32 %v2526_v27, 0.0 }
 0x865   : > { %3959 = vmatpush3.msra.mxu1 %v2752_v36  ;;  %3994 = vmatpush3.msra.mxu0 %v2784_v37  ;;  %v2738_v35 = vld [vmem:[%s4542_s17 + $0x600] sm:$0xff]  ;;  %v2542_v37 = vmax.f32 %v2455_v26, 0.0 }
 0x866   : > { %3960 = vmatprep.subr.mxu1 %v2767_v39  ;;  %3995 = vmatprep.subr.mxu0 %v2799_v40  ;;  %v2770_v36 = vld [vmem:[%s4542_s17 + $0x700] sm:$0xff] }
 0x867   : > { %3961 = vmatpush3.msra.mxu1 %v2751_v41  ;;  %3996 = vmatpush3.msra.mxu0 %v2783_v42  ;;  %v3696_v41 = vld [vmem:[%s771_s24] ss:$0 sm:$0xff] }
 0x868   : > { %3962 = vmatprep.subr.mxu1 %v2766_v60  ;;  %3997 = vmatprep.subr.mxu0 %v2798_v3 }
 0x869   : > { %3963 = vmatpush3.msra.mxu1 %v2750_v2  ;;  %3998 = vmatpush3.msra.mxu0 %v2782_v43 }
 0x86a   : > { %3964 = vmatprep.subr.mxu1 %v2765_v44  ;;  %3999 = vmatprep.subr.mxu0 %v2797_v45 }
 0x86b   : > { %3965 = vmatpush3.msra.mxu1 %v2749_v46  ;;  %4000 = vmatpush3.msra.mxu0 %v2781_v4 }
 0x86c   : > { %3966 = vmatprep.subr.mxu1 %v2764_v47  ;;  %4001 = vmatprep.subr.mxu0 %v2796_v48 }
 0x86d   : > { %3967 = vmatpush3.msra.mxu1 %v2748_v49  ;;  %4002 = vmatpush3.msra.mxu0 %v2780_v50 }
 0x86e   : > { %3968 = vmatprep.subr.mxu1 %v2763_v5  ;;  %4003 = vmatprep.subr.mxu0 %v2795_v51 }
 0x86f   : > { %3969 = vmatpush3.msra.mxu1 %v2747_v52  ;;  %4004 = vmatpush3.msra.mxu0 %v2779_v53 }
 0x870   : > { %3970 = vmatprep.subr.mxu1 %v2762_v54  ;;  %4005 = vmatprep.subr.mxu0 %v2794_v34 }
 0x871   : > { %3971 = vmatpush3.msra.mxu1 %v2746_v55  ;;  %4006 = vmatpush3.msra.mxu0 %v2778_v57 }
 0x872   : > { %3972 = vmatprep.subr.mxu1 %v2761_v56  ;;  %4007 = vmatprep.subr.mxu0 %v2793_v6 }
 0x873   : > { %3973 = vmatpush3.msra.mxu1 %v2745_v7  ;;  %4008 = vmatpush3.msra.mxu0 %v2777_v10 }
 0x874   : > { %3974 = vmatprep.subr.mxu1 %v2760_v11  ;;  %4009 = vmatprep.subr.mxu0 %v2792_v0 }
 0x875   : > { %3975 = vmatpush3.msra.mxu1 %v2744_v1  ;;  %4010 = vmatpush3.msra.mxu0 %v2776_v12 }
 0x876   : > { %3976 = vmatprep.subr.mxu1 %v2759_v13  ;;  %4011 = vmatprep.subr.mxu0 %v2791_v14 }
 0x877   : > { %3977 = vmatpush3.msra.mxu1 %v2743_v15  ;;  %4012 = vmatpush3.msra.mxu0 %v2775_v9 }
 0x878   : > { %3978 = vmatprep.subr.mxu1 %v2758_v19  ;;  %4013 = vmatprep.subr.mxu0 %v2790_v16 }
 0x879   : > { %3979 = vmatpush3.msra.mxu1 %v2742_v17  ;;  %4014 = vmatpush3.msra.mxu0 %v2774_v18 }
 0x87a   : > { %3980 = vmatprep.subr.mxu1 %v2757_v21  ;;  %4015 = vmatprep.subr.mxu0 %v2789_v59 }
 0x87b   : > { %3981 = vmatpush3.msra.mxu1 %v2741_v61  ;;  %4016 = vmatpush3.msra.mxu0 %v2773_v20  ;;  %v3698_v61 = vld [vmem:[%s777_s6] ss:$0 sm:$0xff] }
 0x87c   : > { %3982 = vmatprep.subr.mxu1 %v2756_v22  ;;  %4017 = vmatprep.subr.mxu0 %v2788_v23 }
 0x87d   : > { %3983 = vmatpush3.msra.mxu1 %v2740_v31  ;;  %4018 = vmatpush3.msra.mxu0 %v2772_v38 }
 0x87e   : > { %3984 = vmatprep.subr.mxu1 %v2755_v24  ;;  %4019 = vmatprep.subr.mxu0 %v2787_v25 }
 0x87f   : > { %3985 = vmatpush3.msra.mxu1 %v2739_v28  ;;  %4020 = vmatpush3.msra.mxu0 %v2771_v29 }
 0x880   : > { %3986 = vmatprep.subr.mxu1 %v2754_v30  ;;  %4021 = vmatprep.subr.mxu0 %v2786_v32 }
 0x881   : > { %3987 = vmatpush3.msra.mxu1 %v2738_v35  ;;  %4022 = vmatpush3.msra.mxu0 %v2770_v36 }
 0x882   : > { %3294 = vmatmul.mubr.f32.vlgmr.msra.gmra.mxu1 %v2542_v37  ;;  %3364 = vmatmul.mubr.f32.vlgmr.msra.gmra.mxu0 %v2544_v62 }
 0x8dd   : > { %v3778_v63 = vpop.f32.mrf.mxu1  ;;  %v3813_v58 = vpop.f32.mrf.mxu0 }
 0x8df   : > { %v3779_v33 = vpop.f32.mrf.mxu1  ;;  %v3814_v42 = vpop.f32.mrf.mxu0 }
 0x8e0   : > { %v3780_v40 = vadd.f32 %v3779_v33, %v3778_v63  ;;  %v3815_v44 = vadd.f32 %v3814_v42, %v3813_v58 }
 0x8e2   : > { %v2876_v3 = vadd.f32 %v3780_v40, %v3696_v41 }
 0x8e4   : > { %v2946_v46 = vadd.f32 %v3815_v44, %v2876_v3 }
 0x8fe   : > { %v3848_v39 = vpop.f32.mrf.mxu1  ;;  %v3883_v2 = vpop.f32.mrf.mxu0 }
 0x900   : > { %v3849_v60 = vpop.f32.mrf.mxu1  ;;  %v3884_v4 = vpop.f32.mrf.mxu0 }
 0x901   : > { %v3850_v45 = vadd.f32 %v3849_v60, %v3848_v39  ;;  %v3885_v50 = vadd.f32 %v3884_v4, %v3883_v2 }
 0x903   : > { %v3016_v48 = vadd.f32 %v3850_v45, %v2946_v46 }
 0x905   : > { %v3086_v51 = vadd.f32 %v3885_v50, %v3016_v48 }
 0x920   : > { %v3918_v43 = vpop.f32.mrf.mxu1  ;;  %v3953_v49 = vpop.f32.mrf.mxu0 }
 0x922   : > { %v3919_v47 = vpop.f32.mrf.mxu1  ;;  %v3954_v52 = vpop.f32.mrf.mxu0 }
 0x923   : > { %v3920_v5 = vadd.f32 %v3919_v47, %v3918_v43  ;;  %v3955_v55 = vadd.f32 %v3954_v52, %v3953_v49 }
 0x925   : > { %v3156_v53 = vadd.f32 %v3920_v5, %v3086_v51 }
 0x927   : > { %v3226_v6 = vadd.f32 %v3955_v55, %v3156_v53 }
 0x942   : > { %v3988_v54 = vpop.f32.mrf.mxu1  ;;  %v4023_v34 = vpop.f32.mrf.mxu0 }
 0x944   : > { %v3989_v57 = vpop.f32.mrf.mxu1  ;;  %v4024_v56 = vpop.f32.mrf.mxu0 }
 0x945   : > { %v3990_v7 = vadd.f32 %v3989_v57, %v3988_v54  ;;  %v4025_v11 = vadd.f32 %v4024_v56, %v4023_v34 }
 0x947   : > { %v3296_v10 = vadd.f32 %v3990_v7, %v3226_v6 }
 0x949   : > { %v3366_v0 = vadd.f32 %v4025_v11, %v3296_v10 }
 0x94b   : > { %v3369_v1 = vadd.f32 %v3366_v0, %v4712_v8  ;;  %v3697_v8 = vld [vmem:[%s774_s0] ss:$0 sm:$0xff] }
 0x94d   : > { %v3370_v12 = vsel %vm798_vm1, %v3369_v1, 0.0 }
 0x94e   : > { %3371 = vadd.xlane.f32.xlu1 %v3370_v12 }
 0x9d7   : > { %v3372_v13 = vpop.xlane.xlu1 %3371 }
 0x9d8   : > { %v3374_v14 = vmul.f32 0.03125, %v3372_v13 }
 0x9da   : > { %v3375_v15 = vsub.f32 %v3369_v1, %v3374_v14 }
 0x9dc   : > { %v3376_v9 = vmul.f32 %v3375_v15, %v3375_v15 }
 0x9de   : > { %v3377_v19 = vsel %vm798_vm1, %v3376_v9, 0.0 }
 0x9df   : > { %3378 = vadd.xlane.f32.xlu0 %v3377_v19 }
 0xa68   : > { %v3379_v16 = vpop.xlane.xlu0 %3378 }
 0xa69   : > { %v3380_v17 = vmul.f32 0.03125, %v3379_v16 }
 0xa6b   : > { %v3381_v18 = vadd.f32 1e-05, %v3380_v17 }
 0xa6d   : > { %4205 = vrsqrt.f32 %v3381_v18 }
 0xa7a   : > { %v4206_v21 = vpop.eup %4205 }
 0xa7b   : > { %v3383_v59 = vmul.f32 %v4206_v21, %v3375_v15 }
 0xa7d   : > { %v3391_v20 = vmul.f32 %v3697_v8, %v3383_v59  ;;  %3404 = sbr.rel (%p3699_p1) target bundleno = 2691 (0xa83), region = 92 }
 0xa7f   : > { %v3399_v22 = vadd.f32 %v3698_v61, %v3391_v20 }
 0xa81   : > { %3400 = vst.msk [vmem:[#allocation2] sm:$0xff] %vm798_vm1, %v3399_v22 }
 0xa82   : > { %3405 = vst.msk [vmem:[%s715_s21] sm:$0xff] %vm798_vm1, %v3399_v22 }
 0xa83 PF: > { %s5282_s23 = sld [smem:[#allocation10_spill]]  ;;  %s3420_s10 = sshll.u32 %s715_s21, 4  ;;  %s3421_s10 = int_to_ptr.vmem [resolvable:$true] %s3420_s10 }
 0xa84   : > { %s5283_s0 = sld [smem:[#allocation7_spill]]  ;;  %s4207_s28 = scalar_lea.vmem %s3421_s10, 128 }
 0xa85   : > { %s5285_s6 = sld [smem:[#allocation31_spill]]  ;;  %p4208_p2 = scmp.ne.s32.totalorder %s3421_s10, %s4207_s28 }
 0xa86   : > { %s4309_s19 = smov [#allocation3]  }
 0xa87   : > { %p4209_p4 = pnand %p4208_p2, %p4444_p3  ;;  %s4211_s30 = sshll.u32 %s4309_s19, 4  ;;  %s4212_s30 = int_to_ptr.vmem [resolvable:$false] %s4211_s30 }
 0xa88   : > { %s4213_s15 = scalar_lea.vmem %s4212_s30, 256  ;;  %p4214_p6 = scmp.lt.s32.totalorder %s3421_s10, %s4212_s30 }
 0xa89   : > { %s3701_s22 = sshll.u32 %s5282_s23, 7  ;;  %p4210_p5 = pneg %p4209_p4 }
 0xa8a   : > { %s5286_s25 = sand.u32 1, %s5283_s0   ;;  %p4215_p7 = scmp.lt.s32.totalorder %s4213_s15, %s4207_s28 }
 0xa8b   : > { %s3418_s9 = scalar_lea.hbm %s5285_s6, %s3701_s22  ;;  %s3407_s27 = scalar_lea.sflag [#allocation4], %s5286_s25 }
 0xa8c   : > { %p4216_p8 = por %p4215_p7, %p4214_p6 }
 0xa8e   : > { %p4217_p10 = pnand %p4216_p8, %p4210_p5 }
 0xa90   : > { %4220 = shalt.err (!%p4217_p10)
}
 0xa91   : > { %s4221_s29 = scalar_lea.hbm %s3418_s9, 128  ;;  %s4225_s1 = scalar_lea.hbm %s5285_s6, 256 }
 0xa92   : > { %p4222_p11 = scmp.ne.s32.totalorder %s3418_s9, %s4221_s29  ;;  %p4226_p0 = scmp.lt.s32.totalorder %s3418_s9, %s5285_s6 }
 0xa93   : > { %p4227_p1 = scmp.lt.s32.totalorder %s4225_s1, %s4221_s29 }
 0xa94   : > { %p4223_p12 = pnand %p4222_p11, %p4444_p3 }
 0xa95   : > { %p4228_p2 = por %p4227_p1, %p4226_p0 }
 0xa96   : > { %p4224_p13 = pneg %p4223_p12 }
 0xa98   : > { %p4229_p4 = pnand %p4228_p2, %p4224_p13 }
 0xa9a   : > { %4232 = shalt.err (!%p4229_p4)
}
 0xa9b   : > { %4110 = dma.vmem_to_hbm [thread:$0]  (%p4444_p3), %s3421_s10, 128, %s3418_s9, %s3407_s27  }
 0xa9c PF: > { %s5287_s2 = sld [smem:[#allocation13_spill]] }
 0xa9d   : > { %s5288_s14 = sld [smem:[#allocation6_spill]] }
 0xaa2   : > { %p4116_p5 = scmp.ge.s32.totalorder %s5287_s2, 2 }
 0xaa3   : > { %s3432_s4 = sand.u32 1, %s5288_s14  }
 0xaa4   : > { %p4113_p6 = pnand %p4116_p5, %p4454_p9  ;;  %s3433_s3 = scalar_lea.sflag [#allocation4], %s3432_s4 }
 0xaa6   : > { %p4114_p7 = pneg %p4113_p6 }
 0xaa8   : > { %4266 = dma.done.wait (%p4114_p7), %s3433_s3, 128  }
 0xaa9   : > { %4268 = vsyncadd (%p4114_p7), %s3433_s3, 4294967168  ;;  %s29_s28 = sadd.s32 1, %s5287_s2   ;;  %s5290_s21 = sld [smem:[#allocation7_spill]] }
 0xaaa   : > { %p26_p8 = scmp.ge.s32.totalorder %s29_s28, 6   ;;  %s5291_s22 = sld [smem:[#allocation8_spill]] }
 0xaab   : > { %s5292_s23 = sld [smem:[#allocation18_spill]] }
 0xaac   : > { %s5293_s24 = sld [smem:[#allocation11_spill]]  ;;  %28 = sbr.rel (!%p26_p8) target bundleno = 18 (0x12), region = 172 }
 0xaad   : > { %s5294_s25 = sld [smem:[#allocation12_spill]] }
 0xaae   : > { %s5295_s26 = sld [smem:[#allocation14_spill]] }
 0xaaf   : > { %s5296_s27 = sld [smem:[#allocation16_spill]] }
 0xab1   :  { %3438 = vsyncpa [#allocation4], 1 }
 0xab2   :  { %3440 = vsyncpa [#allocation4 + $0x1], 1 }

</bundles_post_ra>
